<compile_context>
chip_gen: v7x
topology: tpu7x:2x2x1
jax: 0.10.0
libtpu: 0.0.40
codegen_flags: <defaults>
</compile_context>

<pallas_src>
import functools

import jax
import jax.numpy as jnp
from jax.experimental import pallas as pl
from jax.experimental.pallas import tpu as pltpu

ZDIM = 4
HID = 64
EPS = 1e-5


def _disc_kernel(x_ref, w1_ref, w2_ref, pp_ref, o_ref, stats_ref, *, inv_b):
    """pp_ref rows: 0=b1 1=g1 2=be1 3=b2 4=g2 5=be2 6=w3^T 7=b3(replicated).

    stats_ref rows: 0=sum1 1=sumsq1 2=sum2 3=sumsq2 4=scale1 5=shift1
                    6=scale2 7=shift2.
    """
    phase = pl.program_id(0)
    tile = pl.program_id(1)
    first = tile == 0

    # ---- Layer 1 (needed in every phase): Linear(ZDIM, HID) + ReLU, bf16 MXU ----
    xb = x_ref[...].astype(jnp.bfloat16)
    w1 = w1_ref[...].astype(jnp.bfloat16)
    h1 = jnp.dot(xb, w1, preferred_element_type=jnp.float32) + pp_ref[0:1, :]
    h1 = jnp.maximum(h1, 0.0)

    # ---- phase 0: accumulate BN1 statistics (fused sum / sumsq, one pass) ----
    @pl.when(jnp.logical_and(phase == 0, first))
    def _init_stats():
        stats_ref[...] = jnp.zeros_like(stats_ref)

    @pl.when(phase == 0)
    def _accum_bn1():
        stats_ref[0:1, :] += jnp.sum(h1, axis=0, keepdims=True)
        stats_ref[1:2, :] += jnp.sum(h1 * h1, axis=0, keepdims=True)

    # ---- phase 1 entry: finalize BN1 scale/shift from batch stats ----
    @pl.when(jnp.logical_and(phase == 1, first))
    def _finalize_bn1():
        mean = stats_ref[0:1, :] * inv_b
        var = jnp.maximum(stats_ref[1:2, :] * inv_b - mean * mean, 0.0)
        scale = pp_ref[1:2, :] * jax.lax.rsqrt(var + EPS)
        stats_ref[4:5, :] = scale
        stats_ref[5:6, :] = pp_ref[2:3, :] - mean * scale

    # ---- phases 1 & 2: BN1 + Linear(HID, HID) + ReLU ----
    @pl.when(phase >= 1)
    def _layers23():
        h1n = h1 * stats_ref[4:5, :] + stats_ref[5:6, :]
        w2 = w2_ref[...].astype(jnp.bfloat16)
        h2 = jnp.dot(h1n.astype(jnp.bfloat16), w2,
                     preferred_element_type=jnp.float32) + pp_ref[3:4, :]
        h2 = jnp.maximum(h2, 0.0)

        @pl.when(phase == 1)
        def _accum_bn2():
            stats_ref[2:3, :] += jnp.sum(h2, axis=0, keepdims=True)
            stats_ref[3:4, :] += jnp.sum(h2 * h2, axis=0, keepdims=True)

        @pl.when(jnp.logical_and(phase == 2, first))
        def _finalize_bn2():
            mean = stats_ref[2:3, :] * inv_b
            var = jnp.maximum(stats_ref[3:4, :] * inv_b - mean * mean, 0.0)
            scale = pp_ref[4:5, :] * jax.lax.rsqrt(var + EPS)
            stats_ref[6:7, :] = scale
            stats_ref[7:8, :] = pp_ref[5:6, :] - mean * scale

        @pl.when(phase == 2)
        def _output():
            h2n = h2 * stats_ref[6:7, :] + stats_ref[7:8, :]
            # Final Linear(HID, 1): VPU multiply + lane reduce (no 1-wide matmul).
            logit = (jnp.sum(h2n * pp_ref[6:7, :], axis=-1, keepdims=True)
                     + pp_ref[7:8, 0:1])
            o_ref[...] = pl.reciprocal(1.0 + jnp.exp(-logit), approx=True)


def _pick_tile(b, cap):
    """Largest multiple of 8 that divides b, capped at `cap`; full batch otherwise."""
    if b % 8 != 0 or b <= 8:
        return b  # single full-array block (always a legal BlockSpec)
    tb = min(cap, b)
    tb -= tb % 8
    while b % tb != 0:
        tb -= 8
    return tb


def discriminator_forward(x, params, *, tile_b=512):
    """x: [B, ZDIM] float32 -> [B, 1] float32 (training-mode BatchNorm)."""
    B = x.shape[0]
    tb = _pick_tile(B, tile_b)
    nb = B // tb

    # Pack the seven small parameter vectors into a single (8, HID) f32 tile.
    pp = jnp.concatenate(
        [
            params["b1"], params["g1"], params["be1"],
            params["b2"], params["g2"], params["be2"],
            params["w3"].reshape(1, HID),
            jnp.broadcast_to(params["b3"].reshape(1, 1), (1, HID)),
        ],
        axis=0,
    ).astype(jnp.float32)

    kernel = functools.partial(_disc_kernel, inv_b=1.0 / B)

    flops = 2 * B * (3 * ZDIM * HID + 2 * HID * HID + HID)
    bytes_accessed = (3 * B * ZDIM * 4 + B * 4
                      + 4 * (ZDIM * HID + HID * HID + 8 * HID))

    grid_spec = pltpu.PrefetchScalarGridSpec(
        num_scalar_prefetch=0,
        grid=(3, nb),  # (phase, batch tile); phase outermost / slowest
        in_specs=[
            pl.BlockSpec((tb, ZDIM), lambda p, t: (t, 0)),   # x tile
            pl.BlockSpec((ZDIM, HID), lambda p, t: (0, 0)),  # W1 (resident)
            pl.BlockSpec((HID, HID), lambda p, t: (0, 0)),   # W2 (resident)
            pl.BlockSpec((8, HID), lambda p, t: (0, 0)),     # packed params
        ],
        out_specs=pl.BlockSpec((tb, 1), lambda p, t: (t, 0)),
        scratch_shapes=[pltpu.VMEM((8, HID), jnp.float32)],  # BN stats / scale-shift
    )

    return pl.pallas_call(
        kernel,
        out_shape=jax.ShapeDtypeStruct((B, 1), jnp.float32),
        grid_spec=grid_spec,
        compiler_params=pltpu.CompilerParams(
            # Batch axis reduces into the stats scratch and the phase axis must be
            # ordered -> both "arbitrary".
            dimension_semantics=("arbitrary", "arbitrary"),
            vmem_limit_bytes=32 * 1024 * 1024,
        ),
        cost_estimate=pl.CostEstimate(
            flops=flops, transcendentals=2 * B, bytes_accessed=bytes_accessed),
    )(x.astype(jnp.float32), params["w1"], params["w2"], pp)


def init_params(key):
    """Deterministic init mimicking PyTorch defaults (uniform +-1/sqrt(fan_in);
    BatchNorm gamma=1, beta=0). Weights stored [in, out]."""
    ks = jax.random.split(key, 6)

    def lin(kw, kb, fan_in, fan_out):
        bound = 1.0 / jnp.sqrt(float(fan_in))
        w = jax.random.uniform(kw, (fan_in, fan_out), jnp.float32, -bound, bound)
        b = jax.random.uniform(kb, (1, fan_out), jnp.float32, -bound, bound)
        return w, b

    w1, b1 = lin(ks[0], ks[1], ZDIM, HID)
    w2, b2 = lin(ks[2], ks[3], HID, HID)
    w3, b3 = lin(ks[4], ks[5], HID, 1)
    return {
        "w1": w1, "b1": b1, "g1": jnp.ones((1, HID), jnp.float32),
        "be1": jnp.zeros((1, HID), jnp.float32),
        "w2": w2, "b2": b2, "g2": jnp.ones((1, HID), jnp.float32),
        "be2": jnp.zeros((1, HID), jnp.float32),
        "w3": w3, "b3": b3,
    }


def _reference_forward(x, p):
    """Pure-JAX f32 reference for sanity checking."""
    h = jnp.maximum(x @ p["w1"] + p["b1"], 0.0)
    m = h.mean(0, keepdims=True); v = ((h - m) ** 2).mean(0, keepdims=True)
    h = (h - m) / jnp.sqrt(v + EPS) * p["g1"] + p["be1"]
    h = jnp.maximum(h @ p["w2"] + p["b2"], 0.0)
    m = h.mean(0, keepdims=True); v = ((h - m) ** 2).mean(0, keepdims=True)
    h = (h - m) / jnp.sqrt(v + EPS) * p["g2"] + p["be2"]
    return jax.nn.sigmoid(h @ p["w3"] + p["b3"])


if __name__ == "__main__":
    key = jax.random.PRNGKey(0)
    k_x, k_p = jax.random.split(key)

    B = 256
    x = jax.random.normal(k_x, (B, ZDIM), jnp.float32)
    params = init_params(k_p)

    # tile_b=128 -> grid = (3 phases, 2 batch tiles): exercises the tiled path.
    out = discriminator_forward(x, params, tile_b=128)
    out = jax.block_until_ready(out)

    ref = _reference_forward(x, params)
    assert out.shape == (B, 1)
    assert bool(jnp.all(jnp.isfinite(out))), "non-finite output"
    # bf16 matmul operands + approx reciprocal -> loosen vs the f32 reference.
    max_err = float(jnp.max(jnp.abs(out - ref)))
    assert jnp.allclose(out, ref, atol=3e-2, rtol=3e-2), (
        f"mismatch vs reference, max abs err = {max_err}")

    print("KERNEL_OK")
</pallas_src>

<mosaic_0001>
module attributes {stable_mosaic.version = 11 : i64} {
  func.func @_disc_kernel(%arg0: i32, %arg1: i32, %arg2: memref<128x4xf32, #tpu.memory_space<vmem>>, %arg3: memref<4x64xf32, #tpu.memory_space<vmem>>, %arg4: memref<64x64xf32, #tpu.memory_space<vmem>>, %arg5: memref<8x64xf32, #tpu.memory_space<vmem>>, %arg6: memref<128x1xf32, #tpu.memory_space<vmem>>, %arg7: memref<8x64xf32, #tpu.memory_space<vmem>>) attributes {dimension_semantics = [#tpu.dimension_semantics<arbitrary>, #tpu.dimension_semantics<arbitrary>], iteration_bounds = array<i64: 3, 2>, scalar_prefetch = 0 : i64, scratch_operands = 1 : i64, tpu.core_type = #tpu.core_type<tc>, window_params = [{transform_indices = @transform_0, window_bounds = array<i64: 128, 4>}, {pipeline_mode = #tpu.pipeline_mode<synchronous>, transform_indices = @transform_1, window_bounds = array<i64: 4, 64>}, {pipeline_mode = #tpu.pipeline_mode<synchronous>, transform_indices = @transform_2, window_bounds = array<i64: 64, 64>}, {pipeline_mode = #tpu.pipeline_mode<synchronous>, transform_indices = @transform_3, window_bounds = array<i64: 8, 64>}, {transform_indices = @transform_4, window_bounds = array<i64: 128, 1>}]} {
    %c0_i32 = arith.constant 0 : i32
    %0 = arith.cmpi eq, %arg1, %c0_i32 : i32
    %c0 = arith.constant 0 : index
    %c0_0 = arith.constant 0 : index
    %1 = vector.load %arg2[%c0, %c0_0] : memref<128x4xf32, #tpu.memory_space<vmem>>, vector<128x4xf32>
    %2 = arith.truncf %1 : vector<128x4xf32> to vector<128x4xbf16>
    %c0_1 = arith.constant 0 : index
    %c0_2 = arith.constant 0 : index
    %3 = vector.load %arg3[%c0_1, %c0_2] : memref<4x64xf32, #tpu.memory_space<vmem>>, vector<4x64xf32>
    %4 = arith.truncf %3 : vector<4x64xf32> to vector<4x64xbf16>
    %cst = arith.constant dense<0.000000e+00> : vector<128x64xf32>
    %5 = tpu.matmul %2, %4, %cst {dimension_numbers = #tpu.dot_dimension_numbers<[1], [0], [0], [1], [0, 0, 1, 1], [], []>} : vector<128x4xbf16>, vector<4x64xbf16>, vector<128x64xf32> -> vector<128x64xf32>
    %c0_3 = arith.constant 0 : index
    %c0_4 = arith.constant 0 : index
    %6 = vector.load %arg5[%c0_3, %c0_4] : memref<8x64xf32, #tpu.memory_space<vmem>>, vector<1x64xf32>
    %7 = vector.broadcast %6 : vector<1x64xf32> to vector<128x64xf32>
    %8 = arith.addf %5, %7 : vector<128x64xf32>
    %cst_5 = arith.constant 0.000000e+00 : f32
    %9 = vector.broadcast %cst_5 : f32 to vector<128x64xf32>
    %10 = arith.maximumf %8, %9 : vector<128x64xf32>
    %c0_i32_6 = arith.constant 0 : i32
    %11 = arith.cmpi eq, %arg0, %c0_i32_6 : i32
    %12 = arith.andi %11, %0 : i1
    %13 = arith.extui %12 : i1 to i32
    %c0_i32_7 = arith.constant 0 : i32
    %14 = arith.cmpi ne, %13, %c0_i32_7 : i32
    scf.if %14 {
      %cst_13 = arith.constant 0.000000e+00 : f32
      %25 = vector.broadcast %cst_13 : f32 to vector<8x64xf32>
      %c0_14 = arith.constant 0 : index
      %c0_15 = arith.constant 0 : index
      %26 = vector.load %arg7[%c0_14, %c0_15] : memref<8x64xf32, #tpu.memory_space<vmem>>, vector<8x64xf32>
      tpu.vector_store %arg7[%c0_14, %c0_15], %25 {strides = array<i32>} : memref<8x64xf32, #tpu.memory_space<vmem>>, vector<8x64xf32>,
    } else {
    }
    %c0_i32_8 = arith.constant 0 : i32
    %15 = arith.cmpi eq, %arg0, %c0_i32_8 : i32
    %16 = arith.extui %15 : i1 to i32
    %c0_i32_9 = arith.constant 0 : i32
    %17 = arith.cmpi ne, %16, %c0_i32_9 : i32
    scf.if %17 {
      %c0_13 = arith.constant 0 : index
      %c0_14 = arith.constant 0 : index
      %25 = vector.load %arg7[%c0_13, %c0_14] : memref<8x64xf32, #tpu.memory_space<vmem>>, vector<1x64xf32>
      %cst_15 = arith.constant dense<0.000000e+00> : vector<64xf32>
      %26 = vector.multi_reduction <add>, %10, %cst_15 [0] : vector<128x64xf32> to vector<64xf32>
      %27 = vector.shape_cast %26 : vector<64xf32> to vector<1x64xf32>
      %28 = arith.addf %25, %27 : vector<1x64xf32>
      %c0_16 = arith.constant 0 : index
      %c0_17 = arith.constant 0 : index
      %29 = vector.load %arg7[%c0_16, %c0_17] : memref<8x64xf32, #tpu.memory_space<vmem>>, vector<1x64xf32>
      tpu.vector_store %arg7[%c0_16, %c0_17], %28 {strides = array<i32>} : memref<8x64xf32, #tpu.memory_space<vmem>>, vector<1x64xf32>,
      %c1 = arith.constant 1 : index
      %c0_18 = arith.constant 0 : index
      %30 = vector.load %arg7[%c1, %c0_18] : memref<8x64xf32, #tpu.memory_space<vmem>>, vector<1x64xf32>
      %31 = arith.mulf %10, %10 : vector<128x64xf32>
      %cst_19 = arith.constant dense<0.000000e+00> : vector<64xf32>
      %32 = vector.multi_reduction <add>, %31, %cst_19 [0] : vector<128x64xf32> to vector<64xf32>
      %33 = vector.shape_cast %32 : vector<64xf32> to vector<1x64xf32>
      %34 = arith.addf %30, %33 : vector<1x64xf32>
      %c1_20 = arith.constant 1 : index
      %c0_21 = arith.constant 0 : index
      %35 = vector.load %arg7[%c1_20, %c0_21] : memref<8x64xf32, #tpu.memory_space<vmem>>, vector<1x64xf32>
      tpu.vector_store %arg7[%c1_20, %c0_21], %34 {strides = array<i32>} : memref<8x64xf32, #tpu.memory_space<vmem>>, vector<1x64xf32>,
    } else {
    }
    %c1_i32 = arith.constant 1 : i32
    %18 = arith.cmpi eq, %arg0, %c1_i32 : i32
    %19 = arith.andi %18, %0 : i1
    %20 = arith.extui %19 : i1 to i32
    %c0_i32_10 = arith.constant 0 : i32
    %21 = arith.cmpi ne, %20, %c0_i32_10 : i32
    scf.if %21 {
      %c0_13 = arith.constant 0 : index
      %c0_14 = arith.constant 0 : index
      %25 = vector.load %arg7[%c0_13, %c0_14] : memref<8x64xf32, #tpu.memory_space<vmem>>, vector<1x64xf32>
      %cst_15 = arith.constant 3.906250e-03 : f32
      %26 = vector.broadcast %cst_15 : f32 to vector<1x64xf32>
      %27 = arith.mulf %25, %26 : vector<1x64xf32>
      %c1 = arith.constant 1 : index
      %c0_16 = arith.constant 0 : index
      %28 = vector.load %arg7[%c1, %c0_16] : memref<8x64xf32, #tpu.memory_space<vmem>>, vector<1x64xf32>
      %cst_17 = arith.constant 3.906250e-03 : f32
      %29 = vector.broadcast %cst_17 : f32 to vector<1x64xf32>
      %30 = arith.mulf %28, %29 : vector<1x64xf32>
      %31 = arith.mulf %27, %27 : vector<1x64xf32>
      %32 = arith.subf %30, %31 : vector<1x64xf32>
      %cst_18 = arith.constant 0.000000e+00 : f32
      %33 = vector.broadcast %cst_18 : f32 to vector<1x64xf32>
      %34 = arith.maximumf %32, %33 : vector<1x64xf32>
      %c1_19 = arith.constant 1 : index
      %c0_20 = arith.constant 0 : index
      %35 = vector.load %arg5[%c1_19, %c0_20] : memref<8x64xf32, #tpu.memory_space<vmem>>, vector<1x64xf32>
      %cst_21 = arith.constant 9.99999974E-6 : f32
      %36 = vector.broadcast %cst_21 : f32 to vector<1x64xf32>
      %37 = arith.addf %34, %36 : vector<1x64xf32>
      %38 = math.rsqrt %37 : vector<1x64xf32>
      %39 = arith.mulf %35, %38 : vector<1x64xf32>
      %c4 = arith.constant 4 : index
      %c0_22 = arith.constant 0 : index
      %40 = vector.load %arg7[%c4, %c0_22] : memref<8x64xf32, #tpu.memory_space<vmem>>, vector<1x64xf32>
      tpu.vector_store %arg7[%c4, %c0_22], %39 {strides = array<i32>} : memref<8x64xf32, #tpu.memory_space<vmem>>, vector<1x64xf32>,
      %c2 = arith.constant 2 : index
      %c0_23 = arith.constant 0 : index
      %41 = vector.load %arg5[%c2, %c0_23] : memref<8x64xf32, #tpu.memory_space<vmem>>, vector<1x64xf32>
      %42 = arith.mulf %27, %39 : vector<1x64xf32>
      %43 = arith.subf %41, %42 : vector<1x64xf32>
      %c5 = arith.constant 5 : index
      %c0_24 = arith.constant 0 : index
      %44 = vector.load %arg7[%c5, %c0_24] : memref<8x64xf32, #tpu.memory_space<vmem>>, vector<1x64xf32>
      tpu.vector_store %arg7[%c5, %c0_24], %43 {strides = array<i32>} : memref<8x64xf32, #tpu.memory_space<vmem>>, vector<1x64xf32>,
    } else {
    }
    %c1_i32_11 = arith.constant 1 : i32
    %22 = arith.cmpi sge, %arg0, %c1_i32_11 : i32
    %23 = arith.extui %22 : i1 to i32
    %c0_i32_12 = arith.constant 0 : i32
    %24 = arith.cmpi ne, %23, %c0_i32_12 : i32
    scf.if %24 {
      %c4 = arith.constant 4 : index
      %c0_13 = arith.constant 0 : index
      %25 = vector.load %arg7[%c4, %c0_13] : memref<8x64xf32, #tpu.memory_space<vmem>>, vector<1x64xf32>
      %26 = vector.broadcast %25 : vector<1x64xf32> to vector<128x64xf32>
      %27 = arith.mulf %10, %26 : vector<128x64xf32>
      %c5 = arith.constant 5 : index
      %c0_14 = arith.constant 0 : index
      %28 = vector.load %arg7[%c5, %c0_14] : memref<8x64xf32, #tpu.memory_space<vmem>>, vector<1x64xf32>
      %29 = vector.broadcast %28 : vector<1x64xf32> to vector<128x64xf32>
      %30 = arith.addf %27, %29 : vector<128x64xf32>
      %c0_15 = arith.constant 0 : index
      %c0_16 = arith.constant 0 : index
      %31 = vector.load %arg4[%c0_15, %c0_16] : memref<64x64xf32, #tpu.memory_space<vmem>>, vector<64x64xf32>
      %32 = arith.truncf %31 : vector<64x64xf32> to vector<64x64xbf16>
      %33 = arith.truncf %30 : vector<128x64xf32> to vector<128x64xbf16>
      %cst_17 = arith.constant dense<0.000000e+00> : vector<128x64xf32>
      %34 = tpu.matmul %33, %32, %cst_17 {dimension_numbers = #tpu.dot_dimension_numbers<[1], [0], [0], [1], [0, 0, 1, 1], [], []>} : vector<128x64xbf16>, vector<64x64xbf16>, vector<128x64xf32> -> vector<128x64xf32>
      %c3 = arith.constant 3 : index
      %c0_18 = arith.constant 0 : index
      %35 = vector.load %arg5[%c3, %c0_18] : memref<8x64xf32, #tpu.memory_space<vmem>>, vector<1x64xf32>
      %36 = vector.broadcast %35 : vector<1x64xf32> to vector<128x64xf32>
      %37 = arith.addf %34, %36 : vector<128x64xf32>
      %cst_19 = arith.constant 0.000000e+00 : f32
      %38 = vector.broadcast %cst_19 : f32 to vector<128x64xf32>
      %39 = arith.maximumf %37, %38 : vector<128x64xf32>
      %c1_i32_20 = arith.constant 1 : i32
      %40 = arith.cmpi eq, %arg0, %c1_i32_20 : i32
      %41 = arith.extui %40 : i1 to i32
      %c0_i32_21 = arith.constant 0 : i32
      %42 = arith.cmpi ne, %41, %c0_i32_21 : i32
      scf.if %42 {
        %c2 = arith.constant 2 : index
        %c0_25 = arith.constant 0 : index
        %50 = vector.load %arg7[%c2, %c0_25] : memref<8x64xf32, #tpu.memory_space<vmem>>, vector<1x64xf32>
        %cst_26 = arith.constant dense<0.000000e+00> : vector<64xf32>
        %51 = vector.multi_reduction <add>, %39, %cst_26 [0] : vector<128x64xf32> to vector<64xf32>
        %52 = vector.shape_cast %51 : vector<64xf32> to vector<1x64xf32>
        %53 = arith.addf %50, %52 : vector<1x64xf32>
        %c2_27 = arith.constant 2 : index
        %c0_28 = arith.constant 0 : index
        %54 = vector.load %arg7[%c2_27, %c0_28] : memref<8x64xf32, #tpu.memory_space<vmem>>, vector<1x64xf32>
        tpu.vector_store %arg7[%c2_27, %c0_28], %53 {strides = array<i32>} : memref<8x64xf32, #tpu.memory_space<vmem>>, vector<1x64xf32>,
        %c3_29 = arith.constant 3 : index
        %c0_30 = arith.constant 0 : index
        %55 = vector.load %arg7[%c3_29, %c0_30] : memref<8x64xf32, #tpu.memory_space<vmem>>, vector<1x64xf32>
        %56 = arith.mulf %39, %39 : vector<128x64xf32>
        %cst_31 = arith.constant dense<0.000000e+00> : vector<64xf32>
        %57 = vector.multi_reduction <add>, %56, %cst_31 [0] : vector<128x64xf32> to vector<64xf32>
        %58 = vector.shape_cast %57 : vector<64xf32> to vector<1x64xf32>
        %59 = arith.addf %55, %58 : vector<1x64xf32>
        %c3_32 = arith.constant 3 : index
        %c0_33 = arith.constant 0 : index
        %60 = vector.load %arg7[%c3_32, %c0_33] : memref<8x64xf32, #tpu.memory_space<vmem>>, vector<1x64xf32>
        tpu.vector_store %arg7[%c3_32, %c0_33], %59 {strides = array<i32>} : memref<8x64xf32, #tpu.memory_space<vmem>>, vector<1x64xf32>,
      } else {
      }
      %c2_i32 = arith.constant 2 : i32
      %43 = arith.cmpi eq, %arg0, %c2_i32 : i32
      %44 = arith.andi %43, %0 : i1
      %45 = arith.extui %44 : i1 to i32
      %c0_i32_22 = arith.constant 0 : i32
      %46 = arith.cmpi ne, %45, %c0_i32_22 : i32
      scf.if %46 {
        %c2 = arith.constant 2 : index
        %c0_25 = arith.constant 0 : index
        %50 = vector.load %arg7[%c2, %c0_25] : memref<8x64xf32, #tpu.memory_space<vmem>>, vector<1x64xf32>
        %cst_26 = arith.constant 3.906250e-03 : f32
        %51 = vector.broadcast %cst_26 : f32 to vector<1x64xf32>
        %52 = arith.mulf %50, %51 : vector<1x64xf32>
        %c3_27 = arith.constant 3 : index
        %c0_28 = arith.constant 0 : index
        %53 = vector.load %arg7[%c3_27, %c0_28] : memref<8x64xf32, #tpu.memory_space<vmem>>, vector<1x64xf32>
        %cst_29 = arith.constant 3.906250e-03 : f32
        %54 = vector.broadcast %cst_29 : f32 to vector<1x64xf32>
        %55 = arith.mulf %53, %54 : vector<1x64xf32>
        %56 = arith.mulf %52, %52 : vector<1x64xf32>
        %57 = arith.subf %55, %56 : vector<1x64xf32>
        %cst_30 = arith.constant 0.000000e+00 : f32
        %58 = vector.broadcast %cst_30 : f32 to vector<1x64xf32>
        %59 = arith.maximumf %57, %58 : vector<1x64xf32>
        %c4_31 = arith.constant 4 : index
        %c0_32 = arith.constant 0 : index
        %60 = vector.load %arg5[%c4_31, %c0_32] : memref<8x64xf32, #tpu.memory_space<vmem>>, vector<1x64xf32>
        %cst_33 = arith.constant 9.99999974E-6 : f32
        %61 = vector.broadcast %cst_33 : f32 to vector<1x64xf32>
        %62 = arith.addf %59, %61 : vector<1x64xf32>
        %63 = math.rsqrt %62 : vector<1x64xf32>
        %64 = arith.mulf %60, %63 : vector<1x64xf32>
        %c6 = arith.constant 6 : index
        %c0_34 = arith.constant 0 : index
        %65 = vector.load %arg7[%c6, %c0_34] : memref<8x64xf32, #tpu.memory_space<vmem>>, vector<1x64xf32>
        tpu.vector_store %arg7[%c6, %c0_34], %64 {strides = array<i32>} : memref<8x64xf32, #tpu.memory_space<vmem>>, vector<1x64xf32>,
        %c5_35 = arith.constant 5 : index
        %c0_36 = arith.constant 0 : index
        %66 = vector.load %arg5[%c5_35, %c0_36] : memref<8x64xf32, #tpu.memory_space<vmem>>, vector<1x64xf32>
        %67 = arith.mulf %52, %64 : vector<1x64xf32>
        %68 = arith.subf %66, %67 : vector<1x64xf32>
        %c7 = arith.constant 7 : index
        %c0_37 = arith.constant 0 : index
        %69 = vector.load %arg7[%c7, %c0_37] : memref<8x64xf32, #tpu.memory_space<vmem>>, vector<1x64xf32>
        tpu.vector_store %arg7[%c7, %c0_37], %68 {strides = array<i32>} : memref<8x64xf32, #tpu.memory_space<vmem>>, vector<1x64xf32>,
      } else {
      }
      %c2_i32_23 = arith.constant 2 : i32
      %47 = arith.cmpi eq, %arg0, %c2_i32_23 : i32
      %48 = arith.extui %47 : i1 to i32
      %c0_i32_24 = arith.constant 0 : i32
      %49 = arith.cmpi ne, %48, %c0_i32_24 : i32
      scf.if %49 {
        %c6 = arith.constant 6 : index
        %c0_25 = arith.constant 0 : index
        %50 = vector.load %arg7[%c6, %c0_25] : memref<8x64xf32, #tpu.memory_space<vmem>>, vector<1x64xf32>
        %51 = vector.broadcast %50 : vector<1x64xf32> to vector<128x64xf32>
        %52 = arith.mulf %39, %51 : vector<128x64xf32>
        %c7 = arith.constant 7 : index
        %c0_26 = arith.constant 0 : index
        %53 = vector.load %arg7[%c7, %c0_26] : memref<8x64xf32, #tpu.memory_space<vmem>>, vector<1x64xf32>
        %54 = vector.broadcast %53 : vector<1x64xf32> to vector<128x64xf32>
        %55 = arith.addf %52, %54 : vector<128x64xf32>
        %c6_27 = arith.constant 6 : index
        %c0_28 = arith.constant 0 : index
        %56 = vector.load %arg5[%c6_27, %c0_28] : memref<8x64xf32, #tpu.memory_space<vmem>>, vector<1x64xf32>
        %57 = vector.broadcast %56 : vector<1x64xf32> to vector<128x64xf32>
        %58 = arith.mulf %55, %57 : vector<128x64xf32>
        %cst_29 = arith.constant dense<0.000000e+00> : vector<128xf32>
        %59 = vector.multi_reduction <add>, %58, %cst_29 [1] : vector<128x64xf32> to vector<128xf32>
        %60 = vector.shape_cast %59 : vector<128xf32> to vector<128x1xf32>
        %c7_30 = arith.constant 7 : index
        %c0_31 = arith.constant 0 : index
        %61 = vector.load %arg5[%c7_30, %c0_31] : memref<8x64xf32, #tpu.memory_space<vmem>>, vector<1x1xf32>
        %62 = vector.broadcast %61 : vector<1x1xf32> to vector<128x1xf32>
        %63 = arith.addf %60, %62 : vector<128x1xf32>
        %cst_32 = arith.constant 0.000000e+00 : f32
        %64 = vector.broadcast %cst_32 : f32 to vector<128x1xf32>
        %65 = arith.subf %64, %63 : vector<128x1xf32>
        %66 = math.exp %65 : vector<128x1xf32>
        %cst_33 = arith.constant 1.000000e+00 : f32
        %67 = vector.broadcast %cst_33 : f32 to vector<128x1xf32>
        %68 = arith.addf %67, %66 : vector<128x1xf32>
        %69 = tpu.reciprocal %68 {approx = true} : vector<128x1xf32> -> vector<128x1xf32>
        %c0_34 = arith.constant 0 : index
        %c0_35 = arith.constant 0 : index
        %70 = vector.load %arg6[%c0_34, %c0_35] : memref<128x1xf32, #tpu.memory_space<vmem>>, vector<128x1xf32>
        tpu.vector_store %arg6[%c0_34, %c0_35], %69 {strides = array<i32>} : memref<128x1xf32, #tpu.memory_space<vmem>>, vector<128x1xf32>,
      } else {
      }
    } else {
    }
    return
  }
  func.func @transform_0(%arg0: i32, %arg1: i32) -> (i32, i32) {
    %c0_i32 = arith.constant 0 : i32
    %c0_i32_0 = arith.constant 0 : i32
    return %arg1, %c0_i32 : i32, i32
  }
  func.func @transform_1(%arg0: i32, %arg1: i32) -> (i32, i32) {
    %c0_i32 = arith.constant 0 : i32
    %c0_i32_0 = arith.constant 0 : i32
    %c0_i32_1 = arith.constant 0 : i32
    return %c0_i32, %c0_i32_0 : i32, i32
  }
  func.func @transform_2(%arg0: i32, %arg1: i32) -> (i32, i32) {
    %c0_i32 = arith.constant 0 : i32
    %c0_i32_0 = arith.constant 0 : i32
    %c0_i32_1 = arith.constant 0 : i32
    return %c0_i32, %c0_i32_0 : i32, i32
  }
  func.func @transform_3(%arg0: i32, %arg1: i32) -> (i32, i32) {
    %c0_i32 = arith.constant 0 : i32
    %c0_i32_0 = arith.constant 0 : i32
    %c0_i32_1 = arith.constant 0 : i32
    return %c0_i32, %c0_i32_0 : i32, i32
  }
  func.func @transform_4(%arg0: i32, %arg1: i32) -> (i32, i32) {
    %c0_i32 = arith.constant 0 : i32
    %c0_i32_0 = arith.constant 0 : i32
    return %arg1, %c0_i32 : i32, i32
  }
}

</mosaic_0001>

<bundles_post_ra>
// kernel: tpu_custom_call.1
= control target key start
LH: loop header
LB: loop body
LE: loop exit
PB: predicated region body
PF: predicated region fallthrough
CT: control target
= control target key end

     0   :  { %s1438_s15 = smov 0   ;;  %s1440_s16 = smov 0   ;;  %s1941_s0 = inlined_call_operand.vmem [shape: f32[256,4], index: 0, kind: input, shape index: {}]   ;;  %s1942_s1 = inlined_call_operand.vmem [shape: f32[4,64], index: 1, kind: input, shape index: {}]   ;;  %s1943_s2 = inlined_call_operand.vmem [shape: f32[64,64], index: 2, kind: input, shape index: {}]   ;;  %s1944_s3 = inlined_call_operand.vmem [shape: f32[8,64], index: 3, kind: input, shape index: {}]   ;;  %s1945_s4 = inlined_call_operand.vmem [shape: f32[256,1], index: 4, kind: output, shape index: {}]  }
   0x1   :  { %s1442_s17 = smov 0   ;;  %s1444_s18 = smov 0  }
   0x2   :  { %s1446_s19 = smov 0  }
   0x3 LB: > { %s23_s20 = sadd.s32 1, %s1402_s17  ;;  %s26_s21 = sadd.s32 1, %s1406_s18  ;;  %s1410_s19 = sphi %s1446_s19, %s14_s19   ;;  %s1406_s18 = sphi %s1444_s18, %s1950_s18   ;;  %s1402_s17 = sphi %s1442_s17, %s1949_s17   ;;  %s1398_s16 = sphi %s1440_s16, %s1948_s16   ;;  %s1394_s15 = sphi %s1438_s15, %s1947_s15  }
   0x4   : > { %p24_p0 = scmp.ge.s32.totalorder %s23_s20, 2  ;;  %p1153_p1 = scmp.ge.s32.totalorder %s1410_s19, 1 }
   0x5   : > { %p175_p2 = scmp.lt.s32.totalorder %s1410_s19, 7 }
   0x6   : > { %s1952_s20 = smov (%p24_p0, %s23_s20), 0  ;;  %s1954_s21 = smov (!%p24_p0, %s26_s21), %s1406_s18 }
   0x7   : > { %p176_p3 = pnand %p1153_p1, %p175_p2  ;;  %p28_p4 = scmp.ge.s32.totalorder %s1954_s21, 3 }
   0x8   : > { %v239_v0 = vld [vmem:[%s1942_s1] sm:$0xf] (!%p176_p3)  ;;  %vm271_vm0 = vcmask (!%p176_p3), 1041408   ;;  %s1154_s24 = sshll.u32 (!%p176_p3), %s1394_s15, 4  ;;  %vm246_vm1 = vcmask (!%p176_p3), 31744   ;;  %p214_p6 = scmp.eq.s32.totalorder (!%p176_p3), %s1394_s15, 0 }
   0x9   : > { %s1956_s21 = smov (%p28_p4, %s1954_s21), 0  ;;  %179 = sbr.rel (%p176_p3) target bundleno = 873 (0x369), region = 36 }
   0xa   : > { %v240_v1 = vpack.c.bf16 (!%p176_p3), %v239_v0, %v239_v0  ;;  %p202_p5 = scmp.lt.s32.totalorder (!%p176_p3), %s1154_s24, 31  ;;  %p388_p7 = scmp.eq.s32.totalorder (!%p176_p3), %s1398_s16, 0  ;;  %v1158_v27 = vld [vmem:[%s1944_s3] ss:$0 sm:$0xff] (!%p176_p3) }
   0xc   : > { %1261 = vmatprep.subr.msk.bf16.mxu0 (!%p176_p3), %vm271_vm0, %v240_v1  ;;  %1262 = vmatprep.subr.msk.bf16.mxu1 (!%p176_p3), %vm271_vm0, %v240_v1  ;;  %v273_v2 = vsel (!%p176_p3), %vm271_vm0, %v240_v1, 0  ;;  %p1496_p8 = pnand (!%p176_p3), %p388_p7, %p214_p6 }
   0xd   : > { %1210 = vmatpush3.bf16.msra.mxu0 (!%p176_p3), %v273_v2  ;;  %1252 = vmatpush3.bf16.msra.mxu1 (!%p176_p3), %v273_v2 }
  0x10   : > { %s1958_s24 = smov (!%p202_p5, %s1154_s24), 31  ;;  %vm393_vm2 = vcmask (!%p1496_p8), 523264  }
  0x11   : > { %s1155_s25 = sshll.u32 %s1958_s24, 3 }
  0x12   : > { %s205_s28 = scalar_lea.vmem %s1941_s0, %s1155_s25  ;;  %s1482_s5 = scalar_lea.vmem %s1945_s4, %s1155_s25 }
  0x13   : > { %v215_v3 = vld [vmem:[%s205_s28] sm:$0xff]  ;;  %v216_v4 = vld [vmem:[%s205_s28 + $0x8] sm:$0xff]  ;;  %v217_v8 = vld [vmem:[%s205_s28 + $0x10] sm:$0xff] }
  0x14   : > { %v223_v5 = vld [vmem:[%s205_s28 + $0x40] sm:$0xff]  ;;  %v231_v6 = vpack.c.bf16 %v216_v4, %v215_v3  ;;  %v224_v7 = vld [vmem:[%s205_s28 + $0x48] sm:$0xff]  ;;  %v218_v9 = vld [vmem:[%s205_s28 + $0x18] sm:$0xff] }
  0x15   : > { %v235_v10 = vpack.c.bf16 %v224_v7, %v223_v5  ;;  %v232_v11 = vpack.c.bf16 %v218_v9, %v217_v8  ;;  %v225_v12 = vld [vmem:[%s205_s28 + $0x50] sm:$0xff]  ;;  %v226_v13 = vld [vmem:[%s205_s28 + $0x58] sm:$0xff]  ;;  %v219_v14 = vld [vmem:[%s205_s28 + $0x20] sm:$0xff] }
  0x16   : > { %1211 = vmatprep.mubr.msk.bf16.mxu0 %vm246_vm1, %v231_v6  ;;  %v236_v15 = vpack.c.bf16 %v226_v13, %v225_v12  ;;  %v220_v16 = vld [vmem:[%s205_s28 + $0x28] sm:$0xff]  ;;  %v227_v17 = vld [vmem:[%s205_s28 + $0x60] sm:$0xff]  ;;  %v221_v21 = vld [vmem:[%s205_s28 + $0x30] sm:$0xff]  ;;  %v1412_v12 = vmov (!%p1496_p8), 0.0  }
  0x17   : > { %v228_v18 = vld [vmem:[%s205_s28 + $0x68] sm:$0xff]  ;;  %1219 = vmatprep.mubr.msk.bf16.mxu1 %vm246_vm1, %v235_v10  ;;  %1212 = vmatmul.mubr.msk.bf16.vlgmr.msra.gmra.mrb[0].mxu0 %vm246_vm1, %v232_v11  ;;  %v233_v19 = vpack.c.bf16 %v220_v16, %v219_v14  ;;  %v222_v22 = vld [vmem:[%s205_s28 + $0x38] sm:$0xff]  ;;  %v229_v23 = vld [vmem:[%s205_s28 + $0x70] sm:$0xff]  ;;  %394 = vst.msk [vmem:[#allocation2] sm:$0xff] (!%p1496_p8), %vm393_vm2, %v1412_v12 }
  0x18   : > { %v237_v20 = vpack.c.bf16 %v228_v18, %v227_v17  ;;  %1220 = vmatmul.mubr.msk.bf16.vlgmr.msra.gmra.mrb[0].mxu1 %vm246_vm1, %v236_v15  ;;  %v230_v24 = vld [vmem:[%s205_s28 + $0x78] sm:$0xff]  ;;  %v234_v25 = vpack.c.bf16 %v222_v22, %v221_v21 }
  0x19   : > { %1215 = vmatprep.mubr.msk.bf16.mxu0 %vm246_vm1, %v233_v19  ;;  %v238_v26 = vpack.c.bf16 %v230_v24, %v229_v23 }
  0x1a   : > { %1223 = vmatprep.mubr.msk.bf16.mxu1 %vm246_vm1, %v237_v20 }
  0x1f   : > { %1216 = vmatmul.mubr.msk.bf16.gmra.mrb[4].mxu0 %vm246_vm1, %v234_v25 }
  0x20   : > { %1224 = vmatmul.mubr.msk.bf16.gmra.mrb[4].mxu1 %vm246_vm1, %v238_v26 }
  0xea   : > { %v1213_v28 = vpop.f32.mrb[0].mxu0 }
  0xeb   : > { %v318_v29 = vadd.f32 %v1213_v28, %v1158_v27  ;;  %v1221_v30 = vpop.f32.mrb[0].mxu1  ;;  %v309_v31 = vpop.f32.mrb[1].mxu0 }
  0xec   : > { %v350_v32 = vadd.f32 %v1221_v30, %v1158_v27  ;;  %v310_v33 = vadd.f32 %v1158_v27, %v309_v31  ;;  %v341_v34 = vpop.f32.mrb[1].mxu1  ;;  %v1214_v35 = vpop.f32.mrb[2].mxu0 }
  0xed   : > { %v1503_v36 = vmax.f32 %v318_v29, 0.0  ;;  %v342_v37 = vadd.f32 %v1158_v27, %v341_v34  ;;  %v321_v38 = vadd.f32 %v1214_v35, %v1158_v27  ;;  %v1222_v39 = vpop.f32.mrb[2].mxu1  ;;  %v312_v40 = vpop.f32.mrb[3].mxu0 }
  0xee   : > { %v1505_v41 = vmax.f32 %v350_v32, 0.0  ;;  %v1507_v42 = vmax.f32 %v310_v33, 0.0  ;;  %v353_v43 = vadd.f32 %v1222_v39, %v1158_v27  ;;  %v313_v44 = vadd.f32 %v1158_v27, %v312_v40  ;;  %v344_v45 = vpop.f32.mrb[3].mxu1 }
  0xef   : > { %v1509_v46 = vmax.f32 %v342_v37, 0.0  ;;  %v1511_v47 = vmax.f32 %v321_v38, 0.0  ;;  %v345_v48 = vadd.f32 %v1158_v27, %v344_v45 }
  0xf0   : > { %v1513_v49 = vmax.f32 %v353_v43, 0.0  ;;  %v1515_v50 = vmax.f32 %v313_v44, 0.0 }
  0xf1   : > { %v1517_v51 = vmax.f32 %v345_v48, 0.0 }
  0xf2   : > { %v1217_v52 = vpop.f32.mrb[4].mxu0 }
  0xf3   : > { %v334_v53 = vadd.f32 %v1217_v52, %v1158_v27  ;;  %v1225_v54 = vpop.f32.mrb[4].mxu1  ;;  %v325_v55 = vpop.f32.mrb[5].mxu0  ;;  %392 = sbr.rel (%p1496_p8) target bundleno = 250 (0xfa), region = 40 }
  0xf4   : > { %v366_v56 = vadd.f32 %v1225_v54, %v1158_v27  ;;  %v326_v57 = vadd.f32 %v1158_v27, %v325_v55  ;;  %v357_v58 = vpop.f32.mrb[5].mxu1  ;;  %v1218_v59 = vpop.f32.mrb[6].mxu0 }
  0xf5   : > { %v1519_v60 = vmax.f32 %v334_v53, 0.0  ;;  %v358_v61 = vadd.f32 %v1158_v27, %v357_v58  ;;  %v337_v62 = vadd.f32 %v1218_v59, %v1158_v27  ;;  %v1226_v63 = vpop.f32.mrb[6].mxu1  ;;  %v328_v0 = vpop.f32.mrb[7].mxu0 }
  0xf6   : > { %v1521_v1 = vmax.f32 %v366_v56, 0.0  ;;  %v1523_v2 = vmax.f32 %v326_v57, 0.0  ;;  %v369_v3 = vadd.f32 %v1226_v63, %v1158_v27  ;;  %v329_v4 = vadd.f32 %v1158_v27, %v328_v0  ;;  %v360_v5 = vpop.f32.mrb[7].mxu1 }
  0xf7   : > { %v1525_v6 = vmax.f32 %v358_v61, 0.0  ;;  %v1527_v7 = vmax.f32 %v337_v62, 0.0  ;;  %v361_v8 = vadd.f32 %v1158_v27, %v360_v5 }
  0xf8   : > { %v1529_v9 = vmax.f32 %v369_v3, 0.0  ;;  %v1531_v10 = vmax.f32 %v329_v4, 0.0 }
  0xf9   : > { %v1533_v11 = vmax.f32 %v361_v8, 0.0 }
  0xfa PF: > { %p1167_p9 = scmp.ne.s32.totalorder %s1398_s16, 0 }
  0xfb   : > { %vm399_vm3 = vcmask (!%p1167_p9), 523264   ;;  %v441_v20 = vmul.f32 (!%p1167_p9), %v1507_v42, %v1507_v42  ;;  %v442_v21 = vmul.f32 (!%p1167_p9), %v1515_v50, %v1515_v50  ;;  %v443_v23 = vmul.f32 (!%p1167_p9), %v1503_v36, %v1503_v36 }
  0xfc   : > { %397 = sbr.rel (%p1167_p9) target bundleno = 300 (0x12c), region = 44  ;;  %v400_v13 = vsel (!%p1167_p9), %vm399_vm3, %v1507_v42, 0.0  ;;  %v401_v14 = vsel (!%p1167_p9), %vm399_vm3, %v1515_v50, 0.0  ;;  %v403_v15 = vsel (!%p1167_p9), %vm399_vm3, %v1503_v36, 0.0  ;;  %v405_v17 = vsel (!%p1167_p9), %vm399_vm3, %v1511_v47, 0.0 }
  0xfd   : > { %v402_v16 = vadd.f32 (!%p1167_p9), %v401_v14, %v400_v13  ;;  %v407_v19 = vsel (!%p1167_p9), %vm399_vm3, %v1523_v2, 0.0  ;;  %v409_v24 = vsel (!%p1167_p9), %vm399_vm3, %v1531_v10, 0.0  ;;  %v444_v25 = vmul.f32 (!%p1167_p9), %v1511_v47, %v1511_v47 }
  0xfe   : > { %v411_v27 = vsel (!%p1167_p9), %vm399_vm3, %v1519_v60, 0.0  ;;  %v445_v28 = vmul.f32 (!%p1167_p9), %v1523_v2, %v1523_v2  ;;  %v457_v29 = vsel (!%p1167_p9), %vm399_vm3, %v441_v20, 0.0  ;;  %v458_v30 = vsel (!%p1167_p9), %vm399_vm3, %v442_v21, 0.0 }
  0xff   : > { %v404_v18 = vadd.f32 (!%p1167_p9), %v403_v15, %v402_v16  ;;  %v459_v32 = vadd.f32 (!%p1167_p9), %v458_v30, %v457_v29  ;;  %v460_v33 = vsel (!%p1167_p9), %vm399_vm3, %v443_v23, 0.0  ;;  %v413_v34 = vsel (!%p1167_p9), %vm399_vm3, %v1527_v7, 0.0 }
 0x100   : > { %v446_v35 = vmul.f32 (!%p1167_p9), %v1531_v10, %v1531_v10  ;;  %v462_v37 = vsel (!%p1167_p9), %vm399_vm3, %v444_v25, 0.0  ;;  %v415_v40 = vsel (!%p1167_p9), %vm399_vm3, %v1509_v46, 0.0  ;;  %v447_v43 = vmul.f32 (!%p1167_p9), %v1519_v60, %v1519_v60 }
 0x101   : > { %v406_v22 = vadd.f32 (!%p1167_p9), %v405_v17, %v404_v18  ;;  %v461_v39 = vadd.f32 (!%p1167_p9), %v460_v33, %v459_v32  ;;  %v464_v44 = vsel (!%p1167_p9), %vm399_vm3, %v445_v28, 0.0  ;;  %v417_v52 = vsel (!%p1167_p9), %vm399_vm3, %v1517_v51, 0.0 }
 0x102   : > { %v448_v53 = vmul.f32 (!%p1167_p9), %v1527_v7, %v1527_v7  ;;  %v466_v54 = vsel (!%p1167_p9), %vm399_vm3, %v446_v35, 0.0  ;;  %v419_v57 = vsel (!%p1167_p9), %vm399_vm3, %v1505_v41, 0.0  ;;  %v449_v58 = vmul.f32 (!%p1167_p9), %v1509_v46, %v1509_v46 }
 0x103   : > { %v408_v26 = vadd.f32 %v407_v19, %v406_v22  ;;  %v463_v48 = vadd.f32 %v462_v37, %v461_v39  ;;  %v468_v59 = vsel %vm399_vm3, %v447_v43, 0.0  ;;  %v421_v63 = vsel %vm399_vm3, %v1513_v49, 0.0 }
 0x104   : > { %v450_v0 = vmul.f32 %v1517_v51, %v1517_v51  ;;  %v470_v3 = vsel %vm399_vm3, %v448_v53, 0.0  ;;  %v423_v8 = vsel %vm399_vm3, %v1525_v6, 0.0  ;;  %v451_v12 = vmul.f32 %v1505_v41, %v1505_v41 }
 0x105   : > { %v410_v31 = vadd.f32 %v409_v24, %v408_v26  ;;  %v465_v56 = vadd.f32 %v464_v44, %v463_v48  ;;  %v472_v13 = vsel %vm399_vm3, %v449_v58, 0.0  ;;  %v425_v16 = vsel %vm399_vm3, %v1533_v11, 0.0 }
 0x106   : > { %v452_v17 = vmul.f32 %v1513_v49, %v1513_v49  ;;  %v474_v18 = vsel %vm399_vm3, %v450_v0, 0.0  ;;  %v427_v21 = vsel %vm399_vm3, %v1521_v1, 0.0  ;;  %v453_v22 = vmul.f32 %v1525_v6, %v1525_v6 }
 0x107   : > { %v412_v38 = vadd.f32 %v411_v27, %v410_v31  ;;  %v467_v62 = vadd.f32 %v466_v54, %v465_v56  ;;  %v476_v23 = vsel %vm399_vm3, %v451_v12, 0.0  ;;  %v429_v26 = vsel %vm399_vm3, %v1529_v9, 0.0 }
 0x108   : > { %v454_v27 = vmul.f32 %v1533_v11, %v1533_v11  ;;  %v478_v28 = vsel %vm399_vm3, %v452_v17, 0.0  ;;  %v455_v31 = vmul.f32 %v1521_v1, %v1521_v1  ;;  %v480_v32 = vsel %vm399_vm3, %v453_v22, 0.0 }
 0x109   : > { %v414_v45 = vadd.f32 %v413_v34, %v412_v38  ;;  %v469_v5 = vadd.f32 %v468_v59, %v467_v62  ;;  %v456_v35 = vmul.f32 %v1529_v9, %v1529_v9  ;;  %vm438_vm4 = vcmask 516096  }
 0x10a   : > { %v482_v37 = vsel %vm399_vm3, %v454_v27, 0.0 }
 0x10b   : > { %v416_v55 = vadd.f32 %v415_v40, %v414_v45  ;;  %v471_v15 = vadd.f32 %v470_v3, %v469_v5  ;;  %v484_v40 = vsel %vm399_vm3, %v455_v31, 0.0  ;;  %v486_v45 = vsel %vm399_vm3, %v456_v35, 0.0  ;;  %v440_v3 = vld [vmem:[#allocation2 + $0x1] sm:$0x1] }
 0x10d   : > { %v418_v61 = vadd.f32 %v417_v52, %v416_v55  ;;  %v473_v20 = vadd.f32 %v472_v13, %v471_v15 }
 0x10f   : > { %v420_v4 = vadd.f32 %v419_v57, %v418_v61  ;;  %v475_v25 = vadd.f32 %v474_v18, %v473_v20  ;;  %v398_v57 = vld [vmem:[#allocation2] sm:$0x1] }
 0x111   : > { %v422_v14 = vadd.f32 %v421_v63, %v420_v4  ;;  %v477_v30 = vadd.f32 %v476_v23, %v475_v25 }
 0x113   : > { %v424_v19 = vadd.f32 %v423_v8, %v422_v14  ;;  %v479_v34 = vadd.f32 %v478_v28, %v477_v30 }
 0x115   : > { %v426_v24 = vadd.f32 %v425_v16, %v424_v19  ;;  %v481_v39 = vadd.f32 %v480_v32, %v479_v34 }
 0x117   : > { %v428_v29 = vadd.f32 %v427_v21, %v426_v24  ;;  %v483_v44 = vadd.f32 %v482_v37, %v481_v39 }
 0x119   : > { %v430_v33 = vadd.f32 %v429_v26, %v428_v29  ;;  %v485_v52 = vadd.f32 %v484_v40, %v483_v44 }
 0x11b   : > { %v431_v38 = vrot.slane %v430_v33, 4  ;;  %v487_v54 = vadd.f32 %v486_v45, %v485_v52 }
 0x11d   : > { %v432_v43 = vadd.f32 %v431_v38, %v430_v33  ;;  %v488_v56 = vrot.slane %v487_v54, 4 }
 0x11f   : > { %v433_v48 = vrot.slane %v432_v43, 2  ;;  %v489_v59 = vadd.f32 %v488_v56, %v487_v54 }
 0x121   : > { %v434_v53 = vadd.f32 %v433_v48, %v432_v43  ;;  %v490_v62 = vrot.slane %v489_v59, 2 }
 0x123   : > { %v435_v55 = vrot.slane %v434_v53, 1  ;;  %v491_v63 = vadd.f32 %v490_v62, %v489_v59 }
 0x125   : > { %v436_v58 = vadd.f32 %v435_v55, %v434_v53  ;;  %v492_v0 = vrot.slane %v491_v63, 1 }
 0x127   : > { %v437_v61 = vadd.f32 %v436_v58, %v398_v57  ;;  %v493_v4 = vadd.f32 %v492_v0, %v491_v63 }
 0x129   : > { %439 = vst.msk [vmem:[#allocation2] sm:$0x1] %vm438_vm4, %v437_v61  ;;  %v494_v5 = vadd.f32 %v493_v4, %v440_v3 }
 0x12b   : > { %495 = vst.msk [vmem:[#allocation2 + $0x1] sm:$0x1] %vm438_vm4, %v494_v5 }
 0x12c PF: > { %p496_p10 = scmp.eq.s32.totalorder %s1398_s16, 1 }
 0x12e   : > { %p497_p11 = pnand %p496_p10, %p214_p6 }
 0x12f   : > { %v508_v19 = vld [vmem:[%s1944_s3 + $0x1] sm:$0x1] (!%p497_p11)  ;;  %vm512_vm5 = vcmask (!%p497_p11), 516096   ;;  %v514_v22 = vld [vmem:[%s1944_s3 + $0x2] sm:$0x1] (!%p497_p11) }
 0x130   : > { %500 = sbr.rel (%p497_p11) target bundleno = 333 (0x14d), region = 48  ;;  %v501_v8 = vld [vmem:[#allocation2] sm:$0x1] (!%p497_p11) }
 0x131   : > { %v502_v13 = vmul.f32 (!%p497_p11), 0.00390625, %v501_v8 }
 0x132   : > { %v503_v12 = vld [vmem:[#allocation2 + $0x1] sm:$0x1] (!%p497_p11) }
 0x133   : > { %v504_v14 = vmul.f32 (!%p497_p11), 0.00390625, %v503_v12  ;;  %v505_v15 = vmul.f32 (!%p497_p11), %v502_v13, %v502_v13 }
 0x135   : > { %v506_v16 = vsub.f32 (!%p497_p11), %v504_v14, %v505_v15 }
 0x137   : > { %v507_v17 = vmax.f32 %v506_v16, 0.0 }
 0x139   : > { %v509_v18 = vadd.f32 1e-05, %v507_v17 }
 0x13b   : > { %1304 = vrsqrt.f32 %v509_v18 }
 0x145   : > { %v1305_v20 = vpop.eup %1304 }
 0x146   : > { %v511_v21 = vmul.f32 %v1305_v20, %v508_v19 }
 0x148   : > { %513 = vst.msk [vmem:[#allocation2 + $0x4] sm:$0x1] %vm512_vm5, %v511_v21  ;;  %v515_v23 = vmul.f32 %v511_v21, %v502_v13 }
 0x14a   : > { %v516_v24 = vsub.f32 %v514_v22, %v515_v23 }
 0x14c   : > { %517 = vst.msk [vmem:[#allocation2 + $0x5] sm:$0x1] %vm512_vm5, %v516_v24 }
 0x14d PF: > { %p1168_p12 = scmp.lt.s32.totalorder %s1398_s16, 1 }
 0x14e   : > { %v564_v25 = vld [vmem:[%s1943_s2] sm:$0xff] (!%p1168_p12)  ;;  %v565_v26 = vld [vmem:[%s1943_s2 + $0x8] sm:$0xff] (!%p1168_p12)  ;;  %v566_v27 = vld [vmem:[%s1943_s2 + $0x10] sm:$0xff] (!%p1168_p12)  ;;  %vm589_vm6 = vcmask (!%p1168_p12), 523264   ;;  %p1180_p13 = scmp.ne.s32.totalorder (!%p1168_p12), %s1398_s16, 1 }
 0x14f   : > { %521 = sbr.rel (%p1168_p12) target bundleno = 873 (0x369), region = 52  ;;  %v572_v28 = vpack.c.bf16 (!%p1168_p12), %v565_v26, %v564_v25  ;;  %v567_v29 = vld [vmem:[%s1943_s2 + $0x18] sm:$0xff] (!%p1168_p12)  ;;  %v568_v30 = vld [vmem:[%s1943_s2 + $0x20] sm:$0xff] (!%p1168_p12)  ;;  %v569_v31 = vld [vmem:[%s1943_s2 + $0x28] sm:$0xff] (!%p1168_p12) }
 0x150   : > { %v573_v32 = vpack.c.bf16 (!%p1168_p12), %v567_v29, %v566_v27  ;;  %v1169_v33 = vld [vmem:[#allocation2 + $0x4] ss:$0 sm:$0xff] (!%p1168_p12)  ;;  %v574_v38 = vpack.c.bf16 (!%p1168_p12), %v569_v31, %v568_v30 }
 0x151   : > { %1227 = vmatprep.subr.bf16.mxu0 (!%p1168_p12), %v572_v28  ;;  %1253 = vmatprep.subr.bf16.mxu1 (!%p1168_p12), %v572_v28  ;;  %v527_v34 = vmul.f32 (!%p1168_p12), %v1169_v33, %v1507_v42  ;;  %v528_v35 = vmul.f32 (!%p1168_p12), %v1169_v33, %v1515_v50  ;;  %v535_v39 = vmul.f32 (!%p1168_p12), %v1169_v33, %v1509_v46  ;;  %v570_v42 = vld [vmem:[%s1943_s2 + $0x30] sm:$0xff] (!%p1168_p12)  ;;  %v571_v50 = vld [vmem:[%s1943_s2 + $0x38] sm:$0xff] (!%p1168_p12) }
 0x152   : > { %1228 = vmatpush3.bf16.msra.mxu0 (!%p1168_p12), %v572_v28  ;;  %1257 = vmatpush3.bf16.msra.mxu1 (!%p1168_p12), %v572_v28  ;;  %v536_v40 = vmul.f32 (!%p1168_p12), %v1169_v33, %v1517_v51  ;;  %v529_v45 = vmul.f32 (!%p1168_p12), %v1169_v33, %v1503_v36  ;;  %v530_v46 = vmul.f32 (!%p1168_p12), %v1169_v33, %v1511_v47 }
 0x153   : > { %v1170_v37 = vld [vmem:[#allocation2 + $0x5] ss:$0 sm:$0xff] (!%p1168_p12)  ;;  %1229 = vmatprep.subr.bf16.mxu0 (!%p1168_p12), %v573_v32  ;;  %1254 = vmatprep.subr.bf16.mxu1 (!%p1168_p12), %v573_v32  ;;  %v537_v53 = vmul.f32 (!%p1168_p12), %v1169_v33, %v1505_v41  ;;  %v538_v54 = vmul.f32 (!%p1168_p12), %v1169_v33, %v1513_v49  ;;  %v531_v36 = vmul.f32 (!%p1168_p12), %v1169_v33, %v1523_v2 }
 0x154   : > { %v548_v43 = vadd.f32 (!%p1168_p12), %v1170_v37, %v527_v34  ;;  %v549_v44 = vadd.f32 (!%p1168_p12), %v1170_v37, %v528_v35  ;;  %v556_v48 = vadd.f32 (!%p1168_p12), %v1170_v37, %v535_v39  ;;  %v557_v52 = vadd.f32 (!%p1168_p12), %v1170_v37, %v536_v40 }
 0x155   : > { %v532_v56 = vmul.f32 (!%p1168_p12), %v1169_v33, %v1531_v10  ;;  %v575_v57 = vpack.c.bf16 (!%p1168_p12), %v571_v50, %v570_v42  ;;  %v550_v58 = vadd.f32 (!%p1168_p12), %v1170_v37, %v529_v45  ;;  %v551_v47 = vadd.f32 (!%p1168_p12), %v1170_v37, %v530_v46 }
 0x156   : > { %v576_v51 = vpack.c.bf16 %v549_v44, %v548_v43  ;;  %1230 = vmatpush3.bf16.msra.mxu0 %v573_v32  ;;  %1258 = vmatpush3.bf16.msra.mxu1 %v573_v32  ;;  %v580_v55 = vpack.c.bf16 %v557_v52, %v556_v48  ;;  %v539_v41 = vmul.f32 %v1169_v33, %v1525_v6  ;;  %vm769_vm7 = vcmask (!%p1180_p13), 516096  }
 0x157   : > { %1231 = vmatprep.subr.bf16.mxu0 %v574_v38  ;;  %1255 = vmatprep.subr.bf16.mxu1 %v574_v38  ;;  %v540_v49 = vmul.f32 %v1169_v33, %v1533_v11  ;;  %v558_v59 = vadd.f32 %v1170_v37, %v537_v53  ;;  %v559_v2 = vadd.f32 %v1170_v37, %v538_v54 }
 0x158   : > { %1235 = vmatprep.mubr.msk.bf16.mxu0 %vm589_vm6, %v576_v51  ;;  %1243 = vmatprep.mubr.msk.bf16.mxu1 %vm589_vm6, %v580_v55  ;;  %v552_v61 = vadd.f32 %v1170_v37, %v531_v36  ;;  %v553_v62 = vadd.f32 %v1170_v37, %v532_v56  ;;  %v560_v10 = vadd.f32 %v1170_v37, %v539_v41 }
 0x159   : > { %v561_v63 = vadd.f32 %v1170_v37, %v540_v49  ;;  %v577_v0 = vpack.c.bf16 %v551_v47, %v550_v58  ;;  %v533_v3 = vmul.f32 %v1169_v33, %v1519_v60  ;;  %v581_v4 = vpack.c.bf16 %v559_v2, %v558_v59 }
 0x15a   : > { %1232 = vmatpush3.bf16.msra.mxu0 %v574_v38  ;;  %1259 = vmatpush3.bf16.msra.mxu1 %v574_v38  ;;  %v534_v5 = vmul.f32 %v1169_v33, %v1527_v7  ;;  %v541_v6 = vmul.f32 %v1169_v33, %v1521_v1  ;;  %v542_v11 = vmul.f32 %v1169_v33, %v1529_v9  ;;  %v1171_v7 = vld [vmem:[%s1944_s3 + $0x3] ss:$0 sm:$0xff] }
 0x15b   : > { %1233 = vmatprep.subr.bf16.mxu0 %v575_v57  ;;  %1256 = vmatprep.subr.bf16.mxu1 %v575_v57  ;;  %v578_v8 = vpack.c.bf16 %v553_v62, %v552_v61  ;;  %v582_v12 = vpack.c.bf16 %v561_v63, %v560_v10  ;;  %v554_v13 = vadd.f32 %v1170_v37, %v533_v3 }
 0x15c   : > { %v555_v14 = vadd.f32 %v1170_v37, %v534_v5  ;;  %v562_v15 = vadd.f32 %v1170_v37, %v541_v6  ;;  %v563_v16 = vadd.f32 %v1170_v37, %v542_v11 }
 0x15e   : > { %1234 = vmatpush3.bf16.msra.mxu0 %v575_v57  ;;  %1260 = vmatpush3.bf16.msra.mxu1 %v575_v57  ;;  %v579_v60 = vpack.c.bf16 %v555_v14, %v554_v13  ;;  %v583_v1 = vpack.c.bf16 %v563_v16, %v562_v15 }
 0x161   : > { %1236 = vmatmul.mubr.msk.bf16.vlgmr.msra.gmra.mrb[0].mxu0 %vm589_vm6, %v577_v0  ;;  %1244 = vmatmul.mubr.msk.bf16.vlgmr.msra.gmra.mrb[0].mxu1 %vm589_vm6, %v581_v4 }
 0x162   : > { %1239 = vmatprep.mubr.msk.bf16.mxu0 %vm589_vm6, %v578_v8  ;;  %1247 = vmatprep.mubr.msk.bf16.mxu1 %vm589_vm6, %v582_v12 }
 0x169   : > { %1240 = vmatmul.mubr.msk.bf16.gmra.mrb[4].mxu0 %vm589_vm6, %v579_v60  ;;  %1248 = vmatmul.mubr.msk.bf16.gmra.mrb[4].mxu1 %vm589_vm6, %v583_v1 }
 0x234   : > { %v1237_v9 = vpop.f32.mrb[0].mxu0  ;;  %v1245_v17 = vpop.f32.mrb[0].mxu1 }
 0x235   : > { %v657_v18 = vadd.f32 %v1237_v9, %v1171_v7  ;;  %v689_v19 = vadd.f32 %v1245_v17, %v1171_v7  ;;  %v648_v20 = vpop.f32.mrb[1].mxu0  ;;  %v680_v21 = vpop.f32.mrb[1].mxu1 }
 0x236   : > { %v649_v22 = vadd.f32 %v1171_v7, %v648_v20  ;;  %v681_v23 = vadd.f32 %v1171_v7, %v680_v21  ;;  %v1238_v24 = vpop.f32.mrb[2].mxu0  ;;  %v1246_v25 = vpop.f32.mrb[2].mxu1 }
 0x237   : > { %v1679_v26 = vmax.f32 %v657_v18, 0.0  ;;  %v1681_v27 = vmax.f32 %v689_v19, 0.0  ;;  %v660_v28 = vadd.f32 %v1238_v24, %v1171_v7  ;;  %v692_v29 = vadd.f32 %v1246_v25, %v1171_v7  ;;  %v651_v30 = vpop.f32.mrb[3].mxu0  ;;  %v683_v31 = vpop.f32.mrb[3].mxu1 }
 0x238   : > { %v1683_v32 = vmax.f32 %v649_v22, 0.0  ;;  %v1685_v33 = vmax.f32 %v681_v23, 0.0  ;;  %v652_v34 = vadd.f32 %v1171_v7, %v651_v30  ;;  %v684_v35 = vadd.f32 %v1171_v7, %v683_v31 }
 0x239   : > { %v1687_v37 = vmax.f32 %v660_v28, 0.0  ;;  %v1689_v38 = vmax.f32 %v692_v29, 0.0  ;;  %v734_v3 = vsel (!%p1180_p13), %vm589_vm6, %v1679_v26, 0.0  ;;  %v774_v15 = vmul.f32 (!%p1180_p13), %v1679_v26, %v1679_v26 }
 0x23a   : > { %v1691_v39 = vmax.f32 %v652_v34, 0.0  ;;  %v1693_v40 = vmax.f32 %v684_v35, 0.0  ;;  %v731_v63 = vsel (!%p1180_p13), %vm589_vm6, %v1683_v32, 0.0  ;;  %v772_v12 = vmul.f32 (!%p1180_p13), %v1683_v32, %v1683_v32 }
 0x23b   : > { %v736_v5 = vsel (!%p1180_p13), %vm589_vm6, %v1687_v37, 0.0  ;;  %v775_v60 = vmul.f32 (!%p1180_p13), %v1687_v37, %v1687_v37  ;;  %v791_v21 = vsel (!%p1180_p13), %vm589_vm6, %v774_v15, 0.0  ;;  %v746_v25 = vsel (!%p1180_p13), %vm589_vm6, %v1685_v33, 0.0 }
 0x23c   : > { %v1241_v43 = vpop.f32.mrb[4].mxu0  ;;  %v1249_v44 = vpop.f32.mrb[4].mxu1  ;;  %729 = sbr.rel (%p1180_p13) target bundleno = 624 (0x270), region = 56  ;;  %v732_v0 = vsel (!%p1180_p13), %vm589_vm6, %v1691_v39, 0.0  ;;  %v773_v13 = vmul.f32 (!%p1180_p13), %v1691_v39, %v1691_v39  ;;  %v788_v17 = vsel (!%p1180_p13), %vm589_vm6, %v772_v12, 0.0  ;;  %v748_v34 = vsel (!%p1180_p13), %vm589_vm6, %v1693_v40, 0.0 }
 0x23d   : > { %v673_v45 = vadd.f32 %v1241_v43, %v1171_v7  ;;  %v705_v42 = vadd.f32 %v1249_v44, %v1171_v7  ;;  %v664_v50 = vpop.f32.mrb[5].mxu0  ;;  %v696_v48 = vpop.f32.mrb[5].mxu1  ;;  %v733_v4 = vadd.f32 (!%p1180_p13), %v732_v0, %v731_v63  ;;  %v793_v24 = vsel (!%p1180_p13), %vm589_vm6, %v775_v60, 0.0 }
 0x23e   : > { %v665_v52 = vadd.f32 %v1171_v7, %v664_v50  ;;  %v697_v46 = vadd.f32 %v1171_v7, %v696_v48  ;;  %v1242_v51 = vpop.f32.mrb[6].mxu0  ;;  %v1250_v53 = vpop.f32.mrb[6].mxu1  ;;  %v789_v18 = vsel (!%p1180_p13), %vm589_vm6, %v773_v13, 0.0  ;;  %v782_v63 = vmul.f32 (!%p1180_p13), %v1681_v27, %v1681_v27 }
 0x23f   : > { %v1695_v54 = vmax.f32 %v673_v45, 0.0  ;;  %v1697_v36 = vmax.f32 %v705_v42, 0.0  ;;  %v676_v55 = vadd.f32 %v1242_v51, %v1171_v7  ;;  %v708_v56 = vadd.f32 %v1250_v53, %v1171_v7  ;;  %v667_v57 = vpop.f32.mrb[7].mxu0  ;;  %v699_v58 = vpop.f32.mrb[7].mxu1 }
 0x240   : > { %v1699_v47 = vmax.f32 %v665_v52, 0.0  ;;  %v1701_v41 = vmax.f32 %v697_v46, 0.0  ;;  %v668_v49 = vadd.f32 %v1171_v7, %v667_v57  ;;  %v700_v59 = vadd.f32 %v1171_v7, %v699_v58 }
 0x241   : > { %v1703_v2 = vmax.f32 %v676_v55, 0.0  ;;  %v1705_v61 = vmax.f32 %v708_v56, 0.0  ;;  %v735_v6 = vadd.f32 (!%p1180_p13), %v734_v3, %v733_v4  ;;  %v742_v1 = vsel (!%p1180_p13), %vm589_vm6, %v1695_v54, 0.0 }
 0x242   : > { %v1707_v62 = vmax.f32 %v668_v49, 0.0  ;;  %v1709_v10 = vmax.f32 %v700_v59, 0.0  ;;  %v738_v11 = vsel (!%p1180_p13), %vm589_vm6, %v1699_v47, 0.0  ;;  %v776_v9 = vmul.f32 (!%p1180_p13), %v1699_v47, %v1699_v47 }
 0x243   : > { %v737_v8 = vadd.f32 %v736_v5, %v735_v6  ;;  %v744_v19 = vsel %vm589_vm6, %v1703_v2, 0.0  ;;  %v790_v20 = vadd.f32 %v789_v18, %v788_v17  ;;  %v778_v30 = vmul.f32 %v1695_v54, %v1695_v54 }
 0x244   : > { %v740_v14 = vsel %vm589_vm6, %v1707_v62, 0.0  ;;  %v777_v23 = vmul.f32 %v1707_v62, %v1707_v62  ;;  %v795_v31 = vsel %vm589_vm6, %v776_v9, 0.0  ;;  %v779_v44 = vmul.f32 %v1703_v2, %v1703_v2 }
 0x245   : > { %v739_v16 = vadd.f32 %v738_v11, %v737_v8  ;;  %v792_v28 = vadd.f32 %v791_v21, %v790_v20  ;;  %v750_v42 = vsel %vm589_vm6, %v1681_v27, 0.0  ;;  %v780_v52 = vmul.f32 %v1685_v33, %v1685_v33 }
 0x246   : > { %v797_v45 = vsel %vm589_vm6, %v777_v23, 0.0  ;;  %v799_v46 = vsel %vm589_vm6, %v778_v30, 0.0  ;;  %v752_v51 = vsel %vm589_vm6, %v1689_v38, 0.0  ;;  %v781_v56 = vmul.f32 %v1693_v40, %v1693_v40 }
 0x247   : > { %v741_v7 = vadd.f32 %v740_v14, %v739_v16  ;;  %v794_v35 = vadd.f32 %v793_v24, %v792_v28  ;;  %v801_v57 = vsel %vm589_vm6, %v779_v44, 0.0  ;;  %v754_v58 = vsel %vm589_vm6, %v1701_v41, 0.0 }
 0x248   : > { %v803_v0 = vsel %vm589_vm6, %v780_v52, 0.0  ;;  %v756_v3 = vsel %vm589_vm6, %v1709_v10, 0.0  ;;  %v783_v6 = vmul.f32 %v1689_v38, %v1689_v38  ;;  %v805_v11 = vsel %vm589_vm6, %v781_v56, 0.0  ;;  %v771_v56 = vld [vmem:[#allocation2 + $0x3] sm:$0x1] }
 0x249   : > { %v743_v22 = vadd.f32 %v742_v1, %v741_v7  ;;  %v796_v50 = vadd.f32 %v795_v31, %v794_v35  ;;  %v758_v8 = vsel %vm589_vm6, %v1697_v36, 0.0  ;;  %v784_v14 = vmul.f32 %v1701_v41, %v1701_v41 }
 0x24a   : > { %v807_v15 = vsel %vm589_vm6, %v782_v63, 0.0  ;;  %v760_v16 = vsel %vm589_vm6, %v1705_v61, 0.0  ;;  %v785_v7 = vmul.f32 %v1709_v10, %v1709_v10  ;;  %v809_v9 = vsel %vm589_vm6, %v783_v6, 0.0 }
 0x24b   : > { %v745_v29 = vadd.f32 %v744_v19, %v743_v22  ;;  %v798_v53 = vadd.f32 %v797_v45, %v796_v50  ;;  %v786_v19 = vmul.f32 %v1697_v36, %v1697_v36  ;;  %v811_v20 = vsel %vm589_vm6, %v784_v14, 0.0 }
 0x24c   : > { %v787_v23 = vmul.f32 %v1705_v61, %v1705_v61  ;;  %v813_v24 = vsel %vm589_vm6, %v785_v7, 0.0 }
 0x24d   : > { %v747_v43 = vadd.f32 %v746_v25, %v745_v29  ;;  %v800_v49 = vadd.f32 %v799_v46, %v798_v53  ;;  %v815_v29 = vsel %vm589_vm6, %v786_v19, 0.0 }
 0x24f   : > { %v749_v48 = vadd.f32 %v748_v34, %v747_v43  ;;  %v802_v4 = vadd.f32 %v801_v57, %v800_v49  ;;  %v817_v34 = vsel %vm589_vm6, %v787_v23, 0.0 }
 0x251   : > { %v751_v55 = vadd.f32 %v750_v42, %v749_v48  ;;  %v804_v12 = vadd.f32 %v803_v0, %v802_v4  ;;  %v730_v42 = vld [vmem:[#allocation2 + $0x2] sm:$0x1] }
 0x253   : > { %v753_v59 = vadd.f32 %v752_v51, %v751_v55  ;;  %v806_v60 = vadd.f32 %v805_v11, %v804_v12 }
 0x255   : > { %v755_v5 = vadd.f32 %v754_v58, %v753_v59  ;;  %v808_v17 = vadd.f32 %v807_v15, %v806_v60 }
 0x257   : > { %v757_v13 = vadd.f32 %v756_v3, %v755_v5  ;;  %v810_v21 = vadd.f32 %v809_v9, %v808_v17 }
 0x259   : > { %v759_v1 = vadd.f32 %v758_v8, %v757_v13  ;;  %v812_v25 = vadd.f32 %v811_v20, %v810_v21 }
 0x25b   : > { %v761_v18 = vadd.f32 %v760_v16, %v759_v1  ;;  %v814_v30 = vadd.f32 %v813_v24, %v812_v25 }
 0x25d   : > { %v762_v22 = vrot.slane %v761_v18, 4  ;;  %v816_v35 = vadd.f32 %v815_v29, %v814_v30 }
 0x25f   : > { %v763_v28 = vadd.f32 %v762_v22, %v761_v18  ;;  %v818_v44 = vadd.f32 %v817_v34, %v816_v35 }
 0x261   : > { %v764_v31 = vrot.slane %v763_v28, 2  ;;  %v819_v50 = vrot.slane %v818_v44, 4 }
 0x263   : > { %v765_v43 = vadd.f32 %v764_v31, %v763_v28  ;;  %v820_v52 = vadd.f32 %v819_v50, %v818_v44 }
 0x265   : > { %v766_v45 = vrot.slane %v765_v43, 1  ;;  %v821_v51 = vrot.slane %v820_v52, 2 }
 0x267   : > { %v767_v48 = vadd.f32 %v766_v45, %v765_v43  ;;  %v822_v53 = vadd.f32 %v821_v51, %v820_v52 }
 0x269   : > { %v768_v46 = vadd.f32 %v767_v48, %v730_v42  ;;  %v823_v55 = vrot.slane %v822_v53, 1 }
 0x26b   : > { %770 = vst.msk [vmem:[#allocation2 + $0x2] sm:$0x1] %vm769_vm7, %v768_v46  ;;  %v824_v57 = vadd.f32 %v823_v55, %v822_v53 }
 0x26d   : > { %v825_v58 = vadd.f32 %v824_v57, %v771_v56 }
 0x26f   : > { %826 = vst.msk [vmem:[#allocation2 + $0x3] sm:$0x1] %vm769_vm7, %v825_v58 }
 0x270 PF: > { %p827_p0 = scmp.eq.s32.totalorder %s1398_s16, 2 }
 0x272   : > { %p828_p1 = pnand %p827_p0, %p214_p6 }
 0x273   : > { %v832_v49 = vld [vmem:[#allocation2 + $0x2] sm:$0x1] (!%p828_p1)  ;;  %v839_v11 = vld [vmem:[%s1944_s3 + $0x4] sm:$0x1] (!%p828_p1)  ;;  %vm843_vm8 = vcmask (!%p828_p1), 516096  }
 0x274   : > { %831 = sbr.rel (%p828_p1) target bundleno = 657 (0x291), region = 60  ;;  %v833_v63 = vmul.f32 (!%p828_p1), 0.00390625, %v832_v49  ;;  %v845_v13 = vld [vmem:[%s1944_s3 + $0x5] sm:$0x1] (!%p828_p1) }
 0x276   : > { %v834_v59 = vld [vmem:[#allocation2 + $0x3] sm:$0x1] (!%p828_p1)  ;;  %v836_v3 = vmul.f32 (!%p828_p1), %v833_v63, %v833_v63 }
 0x277   : > { %v835_v0 = vmul.f32 (!%p828_p1), 0.00390625, %v834_v59 }
 0x279   : > { %v837_v4 = vsub.f32 (!%p828_p1), %v835_v0, %v836_v3 }
 0x27b   : > { %v838_v5 = vmax.f32 %v837_v4, 0.0 }
 0x27d   : > { %v840_v6 = vadd.f32 1e-05, %v838_v5 }
 0x27f   : > { %1306 = vrsqrt.f32 %v840_v6 }
 0x289   : > { %v1307_v8 = vpop.eup %1306 }
 0x28a   : > { %v842_v12 = vmul.f32 %v1307_v8, %v839_v11 }
 0x28c   : > { %844 = vst.msk [vmem:[#allocation2 + $0x6] sm:$0x1] %vm843_vm8, %v842_v12  ;;  %v846_v14 = vmul.f32 %v842_v12, %v833_v63 }
 0x28e   : > { %v847_v15 = vsub.f32 %v845_v13, %v846_v14 }
 0x290   : > { %848 = vst.msk [vmem:[#allocation2 + $0x7] sm:$0x1] %vm843_vm8, %v847_v15 }
 0x291 PF: > { %p1181_p2 = scmp.ne.s32.totalorder %s1398_s16, 2 }
 0x292   : > { %v1811_v18 = vld [vmem:[%s1944_s3 + $0x6] ss:$0 sm:$0xff] (!%p1181_p2)  ;;  %vm1064_vm9 = vcmask (!%p1181_p2), 7168  }
 0x293   : > { %851 = sbr.rel (%p1181_p2) target bundleno = 873 (0x369), region = 64  ;;  %v1182_v16 = vld [vmem:[#allocation2 + $0x6] ss:$0 sm:$0xff] (!%p1181_p2) }
 0x294   : > { %v859_v1 = vmul.f32 (!%p1181_p2), %v1182_v16, %v1679_v26  ;;  %v857_v7 = vmul.f32 (!%p1181_p2), %v1182_v16, %v1683_v32  ;;  %v860_v9 = vmul.f32 (!%p1181_p2), %v1182_v16, %v1687_v37  ;;  %v858_v17 = vmul.f32 (!%p1181_p2), %v1182_v16, %v1691_v39 }
 0x295   : > { %v862_v19 = vmul.f32 (!%p1181_p2), %v1182_v16, %v1707_v62  ;;  %v861_v20 = vmul.f32 (!%p1181_p2), %v1182_v16, %v1699_v47  ;;  %v864_v21 = vmul.f32 (!%p1181_p2), %v1182_v16, %v1703_v2  ;;  %v863_v24 = vmul.f32 (!%p1181_p2), %v1182_v16, %v1695_v54 }
 0x296   : > { %v866_v44 = vmul.f32 (!%p1181_p2), %v1182_v16, %v1693_v40  ;;  %v865_v45 = vmul.f32 (!%p1181_p2), %v1182_v16, %v1685_v33  ;;  %v868_v53 = vmul.f32 (!%p1181_p2), %v1182_v16, %v1689_v38  ;;  %v867_v40 = vmul.f32 (!%p1181_p2), %v1182_v16, %v1681_v27 }
 0x297   : > { %v1802_v60 = vld [vmem:[#allocation2 + $0x7] ss:$0 sm:$0xff] (!%p1181_p2)  ;;  %v870_v56 = vmul.f32 (!%p1181_p2), %v1182_v16, %v1709_v10  ;;  %v869_v57 = vmul.f32 (!%p1181_p2), %v1182_v16, %v1701_v41  ;;  %v872_v27 = vmul.f32 (!%p1181_p2), %v1182_v16, %v1705_v61  ;;  %v871_v10 = vmul.f32 (!%p1181_p2), %v1182_v16, %v1697_v36 }
 0x298   : > { %v880_v22 = vadd.f32 (!%p1181_p2), %v1802_v60, %v859_v1  ;;  %v878_v26 = vadd.f32 (!%p1181_p2), %v1802_v60, %v857_v7  ;;  %v881_v32 = vadd.f32 (!%p1181_p2), %v1802_v60, %v860_v9  ;;  %v879_v37 = vadd.f32 (!%p1181_p2), %v1802_v60, %v858_v17 }
 0x299   : > { %v883_v39 = vadd.f32 (!%p1181_p2), %v1802_v60, %v862_v19  ;;  %v882_v23 = vadd.f32 (!%p1181_p2), %v1802_v60, %v861_v20  ;;  %v885_v30 = vadd.f32 (!%p1181_p2), %v1802_v60, %v864_v21  ;;  %v884_v34 = vadd.f32 (!%p1181_p2), %v1802_v60, %v863_v24 }
 0x29a   : > { %v901_v62 = vmul.f32 %v1811_v18, %v880_v22  ;;  %v899_v47 = vmul.f32 %v1811_v18, %v878_v26  ;;  %v902_v2 = vmul.f32 %v1811_v18, %v881_v32  ;;  %v900_v25 = vmul.f32 %v1811_v18, %v879_v37 }
 0x29b   : > { %v904_v31 = vmul.f32 %v1811_v18, %v883_v39  ;;  %v903_v54 = vmul.f32 %v1811_v18, %v882_v23  ;;  %v906_v48 = vmul.f32 %v1811_v18, %v885_v30  ;;  %v905_v52 = vmul.f32 %v1811_v18, %v884_v34 }
 0x29c   : > { %v921_v28 = vsel %vm589_vm6, %v901_v62, 0.0  ;;  %v915_v29 = vsel %vm589_vm6, %v899_v47, 0.0  ;;  %v924_v35 = vsel %vm589_vm6, %v902_v2, 0.0  ;;  %v918_v43 = vsel %vm589_vm6, %v900_v25, 0.0 }
 0x29d   : > { %922 = vadd.xlane.f32.xlu1 %v921_v28  ;;  %916 = vadd.xlane.f32.xlu0 %v915_v29  ;;  %v930_v42 = vsel %vm589_vm6, %v904_v31, 0.0  ;;  %v927_v50 = vsel %vm589_vm6, %v903_v54, 0.0  ;;  %v887_v46 = vadd.f32 %v1802_v60, %v866_v44  ;;  %v886_v51 = vadd.f32 %v1802_v60, %v865_v45 }
 0x29e   : > { %v936_v33 = vsel %vm589_vm6, %v906_v48, 0.0  ;;  %v933_v55 = vsel %vm589_vm6, %v905_v52, 0.0  ;;  %v889_v59 = vadd.f32 %v1802_v60, %v868_v53  ;;  %v888_v38 = vadd.f32 %v1802_v60, %v867_v40 }
 0x29f   : > { %v908_v58 = vmul.f32 %v1811_v18, %v887_v46  ;;  %v907_v49 = vmul.f32 %v1811_v18, %v886_v51  ;;  %v891_v63 = vadd.f32 %v1802_v60, %v870_v56  ;;  %v890_v0 = vadd.f32 %v1802_v60, %v869_v57 }
 0x2a0   : > { %v910_v4 = vmul.f32 %v1811_v18, %v889_v59  ;;  %v909_v5 = vmul.f32 %v1811_v18, %v888_v38  ;;  %v893_v6 = vadd.f32 %v1802_v60, %v872_v27  ;;  %v892_v12 = vadd.f32 %v1802_v60, %v871_v10  ;;  %v1876_v60 = vld [vmem:[%s1944_s3 + $0x7] ss:$0 sm:$0xff] }
 0x2a1   : > { %925 = vadd.xlane.f32.xlu1 %v924_v35  ;;  %919 = vadd.xlane.f32.xlu0 %v918_v43  ;;  %v942_v41 = vsel %vm589_vm6, %v908_v58, 0.0  ;;  %v939_v3 = vsel %vm589_vm6, %v907_v49, 0.0  ;;  %v912_v61 = vmul.f32 %v1811_v18, %v891_v63  ;;  %v911_v36 = vmul.f32 %v1811_v18, %v890_v0 }
 0x2a2   : > { %v948_v11 = vsel %vm589_vm6, %v910_v4, 0.0  ;;  %v945_v8 = vsel %vm589_vm6, %v909_v5, 0.0  ;;  %v914_v15 = vmul.f32 %v1811_v18, %v893_v6  ;;  %v913_v16 = vmul.f32 %v1811_v18, %v892_v12 }
 0x2a3   : > { %v954_v13 = vsel %vm589_vm6, %v912_v61, 0.0  ;;  %v951_v14 = vsel %vm589_vm6, %v911_v36, 0.0 }
 0x2a4   : > { %v960_v1 = vsel %vm589_vm6, %v914_v15, 0.0  ;;  %v957_v7 = vsel %vm589_vm6, %v913_v16, 0.0 }
 0x2a5   : > { %931 = vadd.xlane.f32.xlu1 %v930_v42  ;;  %928 = vadd.xlane.f32.xlu0 %v927_v50 }
 0x2a9   : > { %937 = vadd.xlane.f32.xlu1 %v936_v33  ;;  %934 = vadd.xlane.f32.xlu0 %v933_v55 }
 0x2ad   : > { %943 = vadd.xlane.f32.xlu1 %v942_v41  ;;  %940 = vadd.xlane.f32.xlu0 %v939_v3 }
 0x2b1   : > { %949 = vadd.xlane.f32.xlu1 %v948_v11  ;;  %946 = vadd.xlane.f32.xlu0 %v945_v8 }
 0x2b5   : > { %955 = vadd.xlane.f32.xlu1 %v954_v13  ;;  %952 = vadd.xlane.f32.xlu0 %v951_v14 }
 0x2b9   : > { %961 = vadd.xlane.f32.xlu1 %v960_v1  ;;  %958 = vadd.xlane.f32.xlu0 %v957_v7 }
 0x32a   : > { %v923_v9 = vpop.xlane.xlu1 %922  ;;  %v917_v17 = vpop.xlane.xlu0 %916 }
 0x32b   : > { %v970_v19 = vadd.f32 %v1876_v60, %v923_v9  ;;  %v968_v20 = vadd.f32 %v1876_v60, %v917_v17 }
 0x32d   : > { %v986_v18 = vsub.f32 0.0, %v970_v19  ;;  %v984_v21 = vsub.f32 0.0, %v968_v20 }
 0x32e   : > { %v926_v22 = vpop.xlane.xlu1 %925  ;;  %v920_v26 = vpop.xlane.xlu0 %919 }
 0x32f   : > { %v1004_v32 = vmul.f32 1.442695, %v986_v18  ;;  %v1000_v37 = vmul.f32 1.442695, %v984_v21  ;;  %v971_v39 = vadd.f32 %v1876_v60, %v926_v22  ;;  %v969_v23 = vadd.f32 %v1876_v60, %v920_v26 }
 0x331   : > { %1308 = vpow2.f32 %v1004_v32  ;;  %v987_v24 = vsub.f32 0.0, %v971_v39  ;;  %v985_v62 = vsub.f32 0.0, %v969_v23 }
 0x332   : > { %1310 = vpow2.f32 %v1000_v37  ;;  %v932_v47 = vpop.xlane.xlu1 %931  ;;  %v929_v2 = vpop.xlane.xlu0 %928 }
 0x333   : > { %v1006_v25 = vmul.f32 1.442695, %v987_v24  ;;  %v1002_v28 = vmul.f32 1.442695, %v985_v62  ;;  %v973_v29 = vadd.f32 %v1876_v60, %v932_v47  ;;  %v972_v30 = vadd.f32 %v1876_v60, %v929_v2 }
 0x335   : > { %1312 = vpow2.f32 %v1006_v25  ;;  %v989_v31 = vsub.f32 0.0, %v973_v29  ;;  %v988_v54 = vsub.f32 0.0, %v972_v30 }
 0x336   : > { %1314 = vpow2.f32 %v1002_v28  ;;  %v938_v34 = vpop.xlane.xlu1 %937  ;;  %v935_v35 = vpop.xlane.xlu0 %934 }
 0x337   : > { %v1010_v43 = vmul.f32 1.442695, %v989_v31  ;;  %v1008_v44 = vmul.f32 1.442695, %v988_v54  ;;  %v975_v45 = vadd.f32 %v1876_v60, %v938_v34  ;;  %v974_v42 = vadd.f32 %v1876_v60, %v935_v35 }
 0x339   : > { %1316 = vpow2.f32 %v1010_v43  ;;  %v991_v50 = vsub.f32 0.0, %v975_v45  ;;  %v990_v48 = vsub.f32 0.0, %v974_v42 }
 0x33a   : > { %1318 = vpow2.f32 %v1008_v44  ;;  %v944_v52 = vpop.xlane.xlu1 %943  ;;  %v941_v46 = vpop.xlane.xlu0 %940 }
 0x33b   : > { %v1309_v51 = vpop.eup %1308  ;;  %v1014_v53 = vmul.f32 1.442695, %v991_v50  ;;  %v977_v40 = vadd.f32 %v1876_v60, %v944_v52  ;;  %v976_v33 = vadd.f32 %v1876_v60, %v941_v46  ;;  %v1012_v57 = vmul.f32 1.442695, %v990_v48 }
 0x33c   : > { %v1311_v55 = vpop.eup %1310  ;;  %v1034_v56 = vadd.f32 1.0, %v1309_v51 }
 0x33d   : > { %v1032_v58 = vadd.f32 1.0, %v1311_v55  ;;  %1320 = vpow2.f32 %v1014_v53  ;;  %v993_v49 = vsub.f32 0.0, %v977_v40  ;;  %v992_v59 = vsub.f32 0.0, %v976_v33 }
 0x33e   : > { %1322 = vrcp.f32 %v1034_v56  ;;  %v950_v38 = vpop.xlane.xlu1 %949  ;;  %v947_v27 = vpop.xlane.xlu0 %946 }
 0x33f   : > { %v1313_v63 = vpop.eup %1312  ;;  %1324 = vrcp.f32 %v1032_v58  ;;  %v1018_v0 = vmul.f32 1.442695, %v993_v49  ;;  %v979_v10 = vadd.f32 %v1876_v60, %v950_v38  ;;  %v1016_v4 = vmul.f32 1.442695, %v992_v59 }
 0x340   : > { %v1315_v41 = vpop.eup %1314  ;;  %v1035_v3 = vadd.f32 1.0, %v1313_v63  ;;  %1326 = vpow2.f32 %v1012_v57  ;;  %v978_v5 = vadd.f32 %v1876_v60, %v947_v27 }
 0x341   : > { %v1033_v61 = vadd.f32 1.0, %v1315_v41  ;;  %1328 = vpow2.f32 %v1018_v0  ;;  %v995_v6 = vsub.f32 0.0, %v979_v10 }
 0x342   : > { %1330 = vrcp.f32 %v1035_v3  ;;  %v994_v11 = vsub.f32 0.0, %v978_v5  ;;  %v956_v8 = vpop.xlane.xlu1 %955  ;;  %v953_v36 = vpop.xlane.xlu0 %952 }
 0x343   : > { %v1317_v12 = vpop.eup %1316  ;;  %1332 = vrcp.f32 %v1033_v61  ;;  %v1022_v13 = vmul.f32 1.442695, %v995_v6  ;;  %v981_v14 = vadd.f32 %v1876_v60, %v956_v8  ;;  %v980_v15 = vadd.f32 %v1876_v60, %v953_v36 }
 0x344   : > { %v1319_v16 = vpop.eup %1318  ;;  %v1037_v1 = vadd.f32 1.0, %v1317_v12  ;;  %1334 = vpow2.f32 %v1016_v4  ;;  %v1020_v7 = vmul.f32 1.442695, %v994_v11 }
 0x345   : > { %v1036_v9 = vadd.f32 1.0, %v1319_v16  ;;  %1336 = vpow2.f32 %v1022_v13  ;;  %v997_v17 = vsub.f32 0.0, %v981_v14  ;;  %v996_v19 = vsub.f32 0.0, %v980_v15 }
 0x346   : > { %1338 = vrcp.f32 %v1037_v1  ;;  %v962_v20 = vpop.xlane.xlu1 %961  ;;  %v959_v18 = vpop.xlane.xlu0 %958 }
 0x347   : > { %v1321_v21 = vpop.eup %1320  ;;  %1340 = vrcp.f32 %v1036_v9  ;;  %v1026_v22 = vmul.f32 1.442695, %v997_v17  ;;  %v1024_v26 = vmul.f32 1.442695, %v996_v19  ;;  %v983_v32 = vadd.f32 %v1876_v60, %v962_v20 }
 0x348   : > { %v1323_v37 = vpop.eup %1322  ;;  %v1039_v39 = vadd.f32 1.0, %v1321_v21  ;;  %1342 = vpow2.f32 %v1020_v7  ;;  %v982_v23 = vadd.f32 %v1876_v60, %v959_v18 }
 0x349   : > { %v1325_v24 = vpop.eup %1324  ;;  %1067 = vst.msk [vmem:[%s1482_s5 + $0x10] sm:$0xff] %vm1064_vm9, %v1323_v37  ;;  %1344 = vpow2.f32 %v1026_v22  ;;  %v999_v62 = vsub.f32 0.0, %v983_v32 }
 0x34a   : > { %v1327_v47 = vpop.eup %1326  ;;  %1065 = vst.msk [vmem:[%s1482_s5] sm:$0xff] %vm1064_vm9, %v1325_v24  ;;  %1346 = vrcp.f32 %v1039_v39  ;;  %v998_v2 = vsub.f32 0.0, %v982_v23 }
 0x34b   : > { %v1329_v25 = vpop.eup %1328  ;;  %v1038_v28 = vadd.f32 1.0, %v1327_v47  ;;  %1348 = vpow2.f32 %v1024_v26  ;;  %v1030_v29 = vmul.f32 1.442695, %v999_v62 }
 0x34c   : > { %v1331_v30 = vpop.eup %1330  ;;  %v1041_v31 = vadd.f32 1.0, %v1329_v25  ;;  %v1028_v60 = vmul.f32 1.442695, %v998_v2 }
 0x34d   : > { %v1333_v54 = vpop.eup %1332  ;;  %1068 = vst.msk [vmem:[%s1482_s5 + $0x18] sm:$0xff] %vm1064_vm9, %v1331_v30  ;;  %1350 = vrcp.f32 %v1038_v28 }
 0x34e   : > { %v1335_v34 = vpop.eup %1334  ;;  %1066 = vst.msk [vmem:[%s1482_s5 + $0x8] sm:$0xff] %vm1064_vm9, %v1333_v54  ;;  %1352 = vrcp.f32 %v1041_v31 }
 0x34f   : > { %v1337_v35 = vpop.eup %1336  ;;  %v1040_v43 = vadd.f32 1.0, %v1335_v34  ;;  %1354 = vpow2.f32 %v1030_v29 }
 0x350   : > { %v1339_v44 = vpop.eup %1338  ;;  %v1043_v45 = vadd.f32 1.0, %v1337_v35  ;;  %1356 = vpow2.f32 %v1028_v60 }
 0x351   : > { %v1341_v42 = vpop.eup %1340  ;;  %1070 = vst.msk [vmem:[%s1482_s5 + $0x28] sm:$0xff] %vm1064_vm9, %v1339_v44  ;;  %1358 = vrcp.f32 %v1040_v43 }
 0x352   : > { %v1343_v50 = vpop.eup %1342  ;;  %1069 = vst.msk [vmem:[%s1482_s5 + $0x20] sm:$0xff] %vm1064_vm9, %v1341_v42  ;;  %1360 = vrcp.f32 %v1043_v45 }
 0x353   : > { %v1345_v48 = vpop.eup %1344  ;;  %v1042_v52 = vadd.f32 1.0, %v1343_v50 }
 0x354   : > { %v1347_v46 = vpop.eup %1346  ;;  %v1045_v51 = vadd.f32 1.0, %v1345_v48 }
 0x355   : > { %v1349_v53 = vpop.eup %1348  ;;  %1072 = vst.msk [vmem:[%s1482_s5 + $0x38] sm:$0xff] %vm1064_vm9, %v1347_v46  ;;  %1362 = vrcp.f32 %v1042_v52 }
 0x356   : > { %1364 = vrcp.f32 %v1045_v51  ;;  %v1044_v40 = vadd.f32 1.0, %v1349_v53 }
 0x357   : > { %v1351_v33 = vpop.eup %1350 }
 0x358   : > { %v1353_v55 = vpop.eup %1352  ;;  %1071 = vst.msk [vmem:[%s1482_s5 + $0x30] sm:$0xff] %vm1064_vm9, %v1351_v33  ;;  %1366 = vrcp.f32 %v1044_v40 }
 0x359   : > { %v1355_v56 = vpop.eup %1354  ;;  %1074 = vst.msk [vmem:[%s1482_s5 + $0x48] sm:$0xff] %vm1064_vm9, %v1353_v55 }
 0x35a   : > { %v1357_v57 = vpop.eup %1356  ;;  %v1047_v58 = vadd.f32 1.0, %v1355_v56 }
 0x35b   : > { %v1359_v49 = vpop.eup %1358  ;;  %v1046_v59 = vadd.f32 1.0, %v1357_v57 }
 0x35c   : > { %v1361_v38 = vpop.eup %1360  ;;  %1073 = vst.msk [vmem:[%s1482_s5 + $0x40] sm:$0xff] %vm1064_vm9, %v1359_v49  ;;  %1368 = vrcp.f32 %v1047_v58 }
 0x35d   : > { %1076 = vst.msk [vmem:[%s1482_s5 + $0x58] sm:$0xff] %vm1064_vm9, %v1361_v38  ;;  %1370 = vrcp.f32 %v1046_v59 }
 0x35f   : > { %v1363_v27 = vpop.eup %1362 }
 0x360   : > { %v1365_v63 = vpop.eup %1364  ;;  %1075 = vst.msk [vmem:[%s1482_s5 + $0x50] sm:$0xff] %vm1064_vm9, %v1363_v27 }
 0x361   : > { %1078 = vst.msk [vmem:[%s1482_s5 + $0x68] sm:$0xff] %vm1064_vm9, %v1365_v63 }
 0x362   : > { %v1367_v0 = vpop.eup %1366 }
 0x363   : > { %1077 = vst.msk [vmem:[%s1482_s5 + $0x60] sm:$0xff] %vm1064_vm9, %v1367_v0 }
 0x366   : > { %v1369_v10 = vpop.eup %1368 }
 0x367   : > { %v1371_v41 = vpop.eup %1370  ;;  %1080 = vst.msk [vmem:[%s1482_s5 + $0x78] sm:$0xff] %vm1064_vm9, %v1369_v10 }
 0x368   : > { %1079 = vst.msk [vmem:[%s1482_s5 + $0x70] sm:$0xff] %vm1064_vm9, %v1371_v41 }
 0x369 PF: > { %s14_s19 = sadd.s32 1, %s1410_s19   ;;  %s1947_s15 = smov %s1402_s17 }
 0x36a   : > { %p11_p3 = scmp.ge.s32.totalorder %s14_s19, 8   ;;  %s1948_s16 = smov %s1406_s18 }
 0x36b   : > { %s1949_s17 = smov %s1952_s20  ;;  %s1950_s18 = smov %s1956_s21 }
 0x36c   :  { %13 = sbr.rel (!%p11_p3) target bundleno = 3 (0x3), region = 94 }

</bundles_post_ra>
